<compile_context>
chip_gen: v7x
topology: tpu7x:2x2x1
jax: 0.10.0
libtpu: 0.0.40
codegen_flags: <defaults>
</compile_context>

<pallas_src>
import jax
import jax.numpy as jnp
from jax.experimental import pallas as pl
from jax.experimental.pallas import tpu as pltpu


def _pick_row_tile(H, W, target_pixels=2048):
    """Largest divisor `th` of H such that th*W <= target_pixels (falls back to 1)."""
    best = 1
    for th in range(1, H + 1):
        if H % th == 0 and th * W <= target_pixels:
            best = th
    return best


def upsampler_block(x_nchw, W, bias, gamma, beta, *, eps=1e-3, target_tile_pixels=2048):
    """Forward pass of UpsamplerBlock. x_nchw: (N, Cin, H, W) -> (N, Cout, 2H, 2W) float32."""
    del bias  # exactly cancelled by training-mode BatchNorm (mean shifts, variance unchanged)

    N, Cin, H, Wd = x_nchw.shape
    Cout = W.shape[1]
    Cout_p = ((Cout + 31) // 32) * 32           # pad channels so C4 = 4*Cout_p % 128 == 0
    K4, C4 = 4 * Cin, 4 * Cout_p

    # ---------------- host-side prep (one cheap pass over x, tiny weight packing) ----------
    # NCHW -> NHWC, zero-pad one row & one column (the shift halo), cast to bf16.
    xt = jnp.transpose(x_nchw, (0, 2, 3, 1)).astype(jnp.float32)
    xp = jnp.pad(xt, ((0, 0), (0, 1), (0, 1), (0, 0))).astype(jnp.bfloat16)  # (N,H+1,W+1,Cin)

    # Pack the 9 transposed-conv taps into (4*Cin, 4*Cout_p).
    # Column blocks = output parity (oy%2, ox%2) in order ee, eo, oe, oo;
    # row blocks = [x, x_r, x_d, x_dr]:
    #   ee: x@W[1,1]
    #   eo: x@W[1,2] + x_r@W[1,0]
    #   oe: x@W[2,1] + x_d@W[0,1]
    #   oo: x@W[2,2] + x_r@W[2,0] + x_d@W[0,2] + x_dr@W[0,0]
    Wp = jnp.pad(W.astype(jnp.float32), ((0, 0), (0, Cout_p - Cout), (0, 0), (0, 0)))
    Z = jnp.zeros((Cin, Cout_p), jnp.float32)

    def stack4(a, b, c, d):
        return jnp.concatenate([a, b, c, d], axis=0)

    W_ee = stack4(Wp[:, :, 1, 1], Z, Z, Z)
    W_eo = stack4(Wp[:, :, 1, 2], Wp[:, :, 1, 0], Z, Z)
    W_oe = stack4(Wp[:, :, 2, 1], Z, Wp[:, :, 0, 1], Z)
    W_oo = stack4(Wp[:, :, 2, 2], Wp[:, :, 2, 0], Wp[:, :, 0, 2], Wp[:, :, 0, 0])
    Wbig = jnp.concatenate([W_ee, W_eo, W_oe, W_oo], axis=1).astype(jnp.bfloat16)  # (K4, C4)

    th = _pick_row_tile(H, Wd, target_tile_pixels)   # source rows per grid step
    n_tiles = H // th
    rows = th * Wd                                   # matmul rows per grid step
    grid = (N, n_tiles)
    M = N * H * Wd

    # ---------------- kernels -----------------------------------------------------------
    def assemble_x4(xa_ref, xb_ref):
        # xa: (1, th, W+1, Cin) tile; xb: (1, 1, W+1, Cin) halo row (row (i+1)*th, zeros at H).
        xa = xa_ref[0]                                          # (th,   W+1, Cin) bf16
        xb = xb_ref[0]                                          # (1,    W+1, Cin) bf16
        xc = jnp.concatenate([xa, xb], axis=0)                  # (th+1, W+1, Cin)
        x00 = xc[:th, :Wd, :]                                   # x[m,   n  ]
        x01 = xc[:th, 1:, :]                                    # x[m,   n+1]
        x10 = xc[1:, :Wd, :]                                    # x[m+1, n  ]
        x11 = xc[1:, 1:, :]                                     # x[m+1, n+1]
        x4 = jnp.concatenate([x00, x01, x10, x11], axis=-1)     # (th, W, 4*Cin)
        return x4.reshape(rows, K4)

    def stats_kernel(xa_ref, xb_ref, w_ref, stat_ref):
        # Pass 1: conv matmul result stays in VMEM; emit per-tile partial sum / sumsq only.
        x4 = assemble_x4(xa_ref, xb_ref)
        y = jnp.dot(x4, w_ref[...], preferred_element_type=jnp.float32)   # (rows, C4) f32
        s = jnp.sum(y, axis=0, keepdims=True)
        q = jnp.sum(y * y, axis=0, keepdims=True)
        stat_ref[...] = jnp.concatenate([s, q, jnp.zeros((6, C4), jnp.float32)], axis=0)

    def conv_bn_relu_kernel(xa_ref, xb_ref, w_ref, scale_ref, shift_ref, o_ref):
        # Pass 2: recompute matmul, fuse BN (precomputed scale/shift) + ReLU into the store.
        x4 = assemble_x4(xa_ref, xb_ref)
        y = jnp.dot(x4, w_ref[...], preferred_element_type=jnp.float32)
        o_ref[...] = jnp.maximum(y * scale_ref[...] + shift_ref[...], 0.0)

    xa_spec = pl.BlockSpec((1, th, Wd + 1, Cin), lambda n, i: (n, i, 0, 0))
    xb_spec = pl.BlockSpec((1, 1, Wd + 1, Cin), lambda n, i: (n, (i + 1) * th, 0, 0))
    w_spec = pl.BlockSpec((K4, C4), lambda n, i: (0, 0))

    # ---------------- pass 1: per-tile partial BN statistics ----------------------------
    stats = pl.pallas_call(
        stats_kernel,
        out_shape=jax.ShapeDtypeStruct((N * n_tiles * 8, C4), jnp.float32),
        grid_spec=pltpu.PrefetchScalarGridSpec(
            num_scalar_prefetch=0,
            grid=grid,
            in_specs=[xa_spec, xb_spec, w_spec],
            out_specs=pl.BlockSpec((8, C4), lambda n, i: (n * n_tiles + i, 0)),
        ),
        compiler_params=pltpu.CompilerParams(
            dimension_semantics=("parallel", "parallel")),
    )(xp, xp, Wbig)

    # BatchNorm2d (training mode): batch statistics over (N, 2H, 2W), biased variance.
    stats = stats.reshape(N * n_tiles, 8, C4)
    sum4 = jnp.sum(stats[:, 0, :], axis=0)                      # (C4,)
    sq4 = jnp.sum(stats[:, 1, :], axis=0)
    count = jnp.float32(4 * M)                                  # = N * 2H * 2W
    ch_sum = sum4.reshape(4, Cout_p).sum(axis=0)
    ch_sq = sq4.reshape(4, Cout_p).sum(axis=0)
    mean = ch_sum / count
    var = jnp.maximum(ch_sq / count - mean * mean, 0.0)         # clamp cancellation to >= 0
    gamma_p = jnp.pad(gamma.astype(jnp.float32), (0, Cout_p - Cout))
    beta_p = jnp.pad(beta.astype(jnp.float32), (0, Cout_p - Cout))
    scale = gamma_p / jnp.sqrt(var + eps)
    shift = beta_p - mean * scale
    scale4 = jnp.tile(scale, 4)[None, :]                        # (1, C4), per-parity repeat
    shift4 = jnp.tile(shift, 4)[None, :]

    # ---------------- pass 2: conv + BN + ReLU fused, lane-dense output -----------------
    out_flat = pl.pallas_call(
        conv_bn_relu_kernel,
        out_shape=jax.ShapeDtypeStruct((M, C4), jnp.float32),
        grid_spec=pltpu.PrefetchScalarGridSpec(
            num_scalar_prefetch=0,
            grid=grid,
            in_specs=[
                xa_spec, xb_spec, w_spec,
                pl.BlockSpec((1, C4), lambda n, i: (0, 0)),
                pl.BlockSpec((1, C4), lambda n, i: (0, 0)),
            ],
            out_specs=pl.BlockSpec((rows, C4), lambda n, i: (n * n_tiles + i, 0)),
        ),
        compiler_params=pltpu.CompilerParams(
            dimension_semantics=("parallel", "parallel")),
    )(xp, xp, Wbig, scale4, shift4)

    # (N*H*W, 4*Cout_p) -> (N, H, W, py, px, C) -> interleave parities -> NHWC -> NCHW.
    # TODO(synk): the parity interleave could be folded into the out_spec (writing an
    # (N, H, 2, W, 2, Cout_p) layout from the kernel) at the cost of 2-sublane output tiles;
    # kept lane-dense (rows, C4) stores + a single fused XLA transpose instead.
    out = out_flat.reshape(N, H, Wd, 2, 2, Cout_p)[..., :Cout]
    out = out.transpose(0, 1, 3, 2, 4, 5).reshape(N, 2 * H, 2 * Wd, Cout)
    return out.transpose(0, 3, 1, 2)


# --------------------------- Pure-JAX reference ---------------------------- #

def reference_forward(x, W, bias, gamma, beta, eps=1e-3):
    # ConvTranspose2d(3, stride=2, padding=1, output_padding=1) via dilated conv.
    Wf = jnp.flip(W, axis=(2, 3)).transpose(1, 0, 2, 3)  # (Cout, Cin, kh, kw)
    y = jax.lax.conv_general_dilated(
        x, Wf, window_strides=(1, 1), padding=((1, 2), (1, 2)),
        lhs_dilation=(2, 2), rhs_dilation=(1, 1),
        dimension_numbers=("NCHW", "OIHW", "NCHW"))
    y = y + bias[None, :, None, None]
    mean = y.mean(axis=(0, 2, 3))
    var = y.var(axis=(0, 2, 3))  # biased, as PyTorch BN uses for normalization
    yn = (y - mean[None, :, None, None]) / jnp.sqrt(var[None, :, None, None] + eps)
    yn = yn * gamma[None, :, None, None] + beta[None, :, None, None]
    return jnp.maximum(yn, 0.0)


# ---------------------------------- Main ----------------------------------- #

if __name__ == "__main__":
    N, Cin, Cout, H, Wd = 2, 4, 8, 16, 16

    key = jax.random.PRNGKey(0)
    kw, kb, kg, kbeta, kx = jax.random.split(key, 5)
    W = 0.1 * jax.random.normal(kw, (Cin, Cout, 3, 3), jnp.float32)   # ConvTranspose2d weight
    bias = 0.1 * jax.random.normal(kb, (Cout,), jnp.float32)
    gamma = 1.0 + 0.1 * jax.random.normal(kg, (Cout,), jnp.float32)   # BN weight
    beta = 0.1 * jax.random.normal(kbeta, (Cout,), jnp.float32)       # BN bias
    x = jax.random.normal(kx, (N, Cin, H, Wd), jnp.float32)

    # The kernel feeds the MXU in bf16; quantize x / W to bf16-representable values for BOTH
    # paths so the comparison isolates kernel correctness from the input-precision choice.
    x = x.astype(jnp.bfloat16).astype(jnp.float32)
    W = W.astype(jnp.bfloat16).astype(jnp.float32)

    upsampler_jit = jax.jit(upsampler_block)
    out = jax.block_until_ready(upsampler_jit(x, W, bias, gamma, beta))
    ref = jax.block_until_ready(reference_forward(x, W, bias, gamma, beta))

    assert out.shape == (N, Cout, 2 * H, 2 * Wd), out.shape
    max_err = float(jnp.max(jnp.abs(out - ref)))
    assert jnp.allclose(out, ref, atol=2e-3, rtol=2e-3), max_err

    print("KERNEL_OK")
</pallas_src>

<mosaic_0001>
module attributes {stable_mosaic.version = 11 : i64} {
  func.func @stats_kernel(%arg0: i32, %arg1: i32, %arg2: memref<1x16x17x4xbf16, #tpu.memory_space<vmem>>, %arg3: memref<1x1x17x4xbf16, #tpu.memory_space<vmem>>, %arg4: memref<16x128xbf16, #tpu.memory_space<vmem>>, %arg5: memref<8x128xf32, #tpu.memory_space<vmem>>) attributes {dimension_semantics = [#tpu.dimension_semantics<parallel>, #tpu.dimension_semantics<parallel>], iteration_bounds = array<i64: 2, 1>, scalar_prefetch = 0 : i64, scratch_operands = 0 : i64, tpu.core_type = #tpu.core_type<tc>, window_params = [{transform_indices = @transform_0, window_bounds = array<i64: 1, 16, 17, 4>}, {transform_indices = @transform_1, window_bounds = array<i64: 1, 1, 17, 4>}, {pipeline_mode = #tpu.pipeline_mode<synchronous>, transform_indices = @transform_2, window_bounds = array<i64: 16, 128>}, {transform_indices = @transform_3, window_bounds = array<i64: 8, 128>}]} {
    %c0 = arith.constant 0 : index
    %c0_0 = arith.constant 0 : index
    %c0_1 = arith.constant 0 : index
    %c0_2 = arith.constant 0 : index
    %0 = vector.load %arg2[%c0, %c0_0, %c0_1, %c0_2] : memref<1x16x17x4xbf16, #tpu.memory_space<vmem>>, vector<1x16x17x4xbf16>
    %1 = vector.shape_cast %0 : vector<1x16x17x4xbf16> to vector<16x17x4xbf16>
    %c0_3 = arith.constant 0 : index
    %c0_4 = arith.constant 0 : index
    %c0_5 = arith.constant 0 : index
    %c0_6 = arith.constant 0 : index
    %2 = vector.load %arg3[%c0_3, %c0_4, %c0_5, %c0_6] : memref<1x1x17x4xbf16, #tpu.memory_space<vmem>>, vector<1x1x17x4xbf16>
    %3 = vector.shape_cast %2 : vector<1x1x17x4xbf16> to vector<1x17x4xbf16>
    %4 = tpu.concatenate %1, %3 in 0 : vector<16x17x4xbf16>, vector<1x17x4xbf16> -> vector<17x17x4xbf16>
    %5 = vector.extract_strided_slice %4 {offsets = [0, 0, 0], sizes = [16, 16, 4], strides = [1, 1, 1]} : vector<17x17x4xbf16> to vector<16x16x4xbf16>
    %6 = vector.extract_strided_slice %4 {offsets = [0, 1, 0], sizes = [16, 16, 4], strides = [1, 1, 1]} : vector<17x17x4xbf16> to vector<16x16x4xbf16>
    %7 = vector.extract_strided_slice %4 {offsets = [1, 0, 0], sizes = [16, 16, 4], strides = [1, 1, 1]} : vector<17x17x4xbf16> to vector<16x16x4xbf16>
    %8 = vector.extract_strided_slice %4 {offsets = [1, 1, 0], sizes = [16, 16, 4], strides = [1, 1, 1]} : vector<17x17x4xbf16> to vector<16x16x4xbf16>
    %9 = tpu.concatenate %5, %6, %7, %8 in 2 : vector<16x16x4xbf16>, vector<16x16x4xbf16>, vector<16x16x4xbf16>, vector<16x16x4xbf16> -> vector<16x16x16xbf16>
    %10 = vector.shape_cast %9 : vector<16x16x16xbf16> to vector<256x16xbf16>
    %c0_7 = arith.constant 0 : index
    %c0_8 = arith.constant 0 : index
    %11 = vector.load %arg4[%c0_7, %c0_8] : memref<16x128xbf16, #tpu.memory_space<vmem>>, vector<16x128xbf16>
    %cst = arith.constant dense<0.000000e+00> : vector<256x128xf32>
    %12 = tpu.matmul %10, %11, %cst {dimension_numbers = #tpu.dot_dimension_numbers<[1], [0], [0], [1], [0, 0, 1, 1], [], []>} : vector<256x16xbf16>, vector<16x128xbf16>, vector<256x128xf32> -> vector<256x128xf32>
    %cst_9 = arith.constant dense<0.000000e+00> : vector<128xf32>
    %13 = vector.multi_reduction <add>, %12, %cst_9 [0] : vector<256x128xf32> to vector<128xf32>
    %14 = vector.shape_cast %13 : vector<128xf32> to vector<1x128xf32>
    %15 = arith.mulf %12, %12 : vector<256x128xf32>
    %cst_10 = arith.constant dense<0.000000e+00> : vector<128xf32>
    %16 = vector.multi_reduction <add>, %15, %cst_10 [0] : vector<256x128xf32> to vector<128xf32>
    %17 = vector.shape_cast %16 : vector<128xf32> to vector<1x128xf32>
    %cst_11 = arith.constant 0.000000e+00 : f32
    %18 = vector.broadcast %cst_11 : f32 to vector<6x128xf32>
    %19 = tpu.concatenate %14, %17, %18 in 0 : vector<1x128xf32>, vector<1x128xf32>, vector<6x128xf32> -> vector<8x128xf32>
    %c0_12 = arith.constant 0 : index
    %c0_13 = arith.constant 0 : index
    %20 = vector.load %arg5[%c0_12, %c0_13] : memref<8x128xf32, #tpu.memory_space<vmem>>, vector<8x128xf32>
    tpu.vector_store %arg5[%c0_12, %c0_13], %19 {strides = array<i32>} : memref<8x128xf32, #tpu.memory_space<vmem>>, vector<8x128xf32>,
    return
  }
  func.func @transform_0(%arg0: i32, %arg1: i32) -> (i32, i32, i32, i32) {
    %c0_i32 = arith.constant 0 : i32
    %c0_i32_0 = arith.constant 0 : i32
    %c0_i32_1 = arith.constant 0 : i32
    return %arg0, %arg1, %c0_i32, %c0_i32_0 : i32, i32, i32, i32
  }
  func.func @transform_1(%arg0: i32, %arg1: i32) -> (i32, i32, i32, i32) {
    %c1_i32 = arith.constant 1 : i32
    %0 = arith.addi %arg1, %c1_i32 : i32
    %c16_i32 = arith.constant 16 : i32
    %1 = arith.muli %0, %c16_i32 : i32
    %c0_i32 = arith.constant 0 : i32
    %c0_i32_0 = arith.constant 0 : i32
    %c0_i32_1 = arith.constant 0 : i32
    return %arg0, %1, %c0_i32, %c0_i32_0 : i32, i32, i32, i32
  }
  func.func @transform_2(%arg0: i32, %arg1: i32) -> (i32, i32) {
    %c0_i32 = arith.constant 0 : i32
    %c0_i32_0 = arith.constant 0 : i32
    %c0_i32_1 = arith.constant 0 : i32
    return %c0_i32, %c0_i32_0 : i32, i32
  }
  func.func @transform_3(%arg0: i32, %arg1: i32) -> (i32, i32) {
    %c1_i32 = arith.constant 1 : i32
    %0 = arith.muli %arg0, %c1_i32 : i32
    %1 = arith.addi %0, %arg1 : i32
    %c0_i32 = arith.constant 0 : i32
    %c0_i32_0 = arith.constant 0 : i32
    return %1, %c0_i32 : i32, i32
  }
}

module attributes {stable_mosaic.version = 11 : i64} {
  func.func @conv_bn_relu_kernel(%arg0: i32, %arg1: i32, %arg2: memref<1x16x17x4xbf16, #tpu.memory_space<vmem>>, %arg3: memref<1x1x17x4xbf16, #tpu.memory_space<vmem>>, %arg4: memref<16x128xbf16, #tpu.memory_space<vmem>>, %arg5: memref<1x128xf32, #tpu.memory_space<vmem>>, %arg6: memref<1x128xf32, #tpu.memory_space<vmem>>, %arg7: memref<256x128xf32, #tpu.memory_space<vmem>>) attributes {dimension_semantics = [#tpu.dimension_semantics<parallel>, #tpu.dimension_semantics<parallel>], iteration_bounds = array<i64: 2, 1>, scalar_prefetch = 0 : i64, scratch_operands = 0 : i64, tpu.core_type = #tpu.core_type<tc>, window_params = [{transform_indices = @transform_0, window_bounds = array<i64: 1, 16, 17, 4>}, {transform_indices = @transform_1, window_bounds = array<i64: 1, 1, 17, 4>}, {pipeline_mode = #tpu.pipeline_mode<synchronous>, transform_indices = @transform_2, window_bounds = array<i64: 16, 128>}, {pipeline_mode = #tpu.pipeline_mode<synchronous>, transform_indices = @transform_3, window_bounds = array<i64: 1, 128>}, {pipeline_mode = #tpu.pipeline_mode<synchronous>, transform_indices = @transform_4, window_bounds = array<i64: 1, 128>}, {transform_indices = @transform_5, window_bounds = array<i64: 256, 128>}]} {
    %c0 = arith.constant 0 : index
    %c0_0 = arith.constant 0 : index
    %c0_1 = arith.constant 0 : index
    %c0_2 = arith.constant 0 : index
    %0 = vector.load %arg2[%c0, %c0_0, %c0_1, %c0_2] : memref<1x16x17x4xbf16, #tpu.memory_space<vmem>>, vector<1x16x17x4xbf16>
    %1 = vector.shape_cast %0 : vector<1x16x17x4xbf16> to vector<16x17x4xbf16>
    %c0_3 = arith.constant 0 : index
    %c0_4 = arith.constant 0 : index
    %c0_5 = arith.constant 0 : index
    %c0_6 = arith.constant 0 : index
    %2 = vector.load %arg3[%c0_3, %c0_4, %c0_5, %c0_6] : memref<1x1x17x4xbf16, #tpu.memory_space<vmem>>, vector<1x1x17x4xbf16>
    %3 = vector.shape_cast %2 : vector<1x1x17x4xbf16> to vector<1x17x4xbf16>
    %4 = tpu.concatenate %1, %3 in 0 : vector<16x17x4xbf16>, vector<1x17x4xbf16> -> vector<17x17x4xbf16>
    %5 = vector.extract_strided_slice %4 {offsets = [0, 0, 0], sizes = [16, 16, 4], strides = [1, 1, 1]} : vector<17x17x4xbf16> to vector<16x16x4xbf16>
    %6 = vector.extract_strided_slice %4 {offsets = [0, 1, 0], sizes = [16, 16, 4], strides = [1, 1, 1]} : vector<17x17x4xbf16> to vector<16x16x4xbf16>
    %7 = vector.extract_strided_slice %4 {offsets = [1, 0, 0], sizes = [16, 16, 4], strides = [1, 1, 1]} : vector<17x17x4xbf16> to vector<16x16x4xbf16>
    %8 = vector.extract_strided_slice %4 {offsets = [1, 1, 0], sizes = [16, 16, 4], strides = [1, 1, 1]} : vector<17x17x4xbf16> to vector<16x16x4xbf16>
    %9 = tpu.concatenate %5, %6, %7, %8 in 2 : vector<16x16x4xbf16>, vector<16x16x4xbf16>, vector<16x16x4xbf16>, vector<16x16x4xbf16> -> vector<16x16x16xbf16>
    %10 = vector.shape_cast %9 : vector<16x16x16xbf16> to vector<256x16xbf16>
    %c0_7 = arith.constant 0 : index
    %c0_8 = arith.constant 0 : index
    %11 = vector.load %arg4[%c0_7, %c0_8] : memref<16x128xbf16, #tpu.memory_space<vmem>>, vector<16x128xbf16>
    %cst = arith.constant dense<0.000000e+00> : vector<256x128xf32>
    %12 = tpu.matmul %10, %11, %cst {dimension_numbers = #tpu.dot_dimension_numbers<[1], [0], [0], [1], [0, 0, 1, 1], [], []>} : vector<256x16xbf16>, vector<16x128xbf16>, vector<256x128xf32> -> vector<256x128xf32>
    %c0_9 = arith.constant 0 : index
    %c0_10 = arith.constant 0 : index
    %13 = vector.load %arg5[%c0_9, %c0_10] : memref<1x128xf32, #tpu.memory_space<vmem>>, vector<1x128xf32>
    %14 = vector.broadcast %13 : vector<1x128xf32> to vector<256x128xf32>
    %15 = arith.mulf %12, %14 : vector<256x128xf32>
    %c0_11 = arith.constant 0 : index
    %c0_12 = arith.constant 0 : index
    %16 = vector.load %arg6[%c0_11, %c0_12] : memref<1x128xf32, #tpu.memory_space<vmem>>, vector<1x128xf32>
    %17 = vector.broadcast %16 : vector<1x128xf32> to vector<256x128xf32>
    %18 = arith.addf %15, %17 : vector<256x128xf32>
    %cst_13 = arith.constant 0.000000e+00 : f32
    %19 = vector.broadcast %cst_13 : f32 to vector<256x128xf32>
    %20 = arith.maximumf %18, %19 : vector<256x128xf32>
    %c0_14 = arith.constant 0 : index
    %c0_15 = arith.constant 0 : index
    %21 = vector.load %arg7[%c0_14, %c0_15] : memref<256x128xf32, #tpu.memory_space<vmem>>, vector<256x128xf32>
    tpu.vector_store %arg7[%c0_14, %c0_15], %20 {strides = array<i32>} : memref<256x128xf32, #tpu.memory_space<vmem>>, vector<256x128xf32>,
    return
  }
  func.func @transform_0(%arg0: i32, %arg1: i32) -> (i32, i32, i32, i32) {
    %c0_i32 = arith.constant 0 : i32
    %c0_i32_0 = arith.constant 0 : i32
    %c0_i32_1 = arith.constant 0 : i32
    return %arg0, %arg1, %c0_i32, %c0_i32_0 : i32, i32, i32, i32
  }
  func.func @transform_1(%arg0: i32, %arg1: i32) -> (i32, i32, i32, i32) {
    %c1_i32 = arith.constant 1 : i32
    %0 = arith.addi %arg1, %c1_i32 : i32
    %c16_i32 = arith.constant 16 : i32
    %1 = arith.muli %0, %c16_i32 : i32
    %c0_i32 = arith.constant 0 : i32
    %c0_i32_0 = arith.constant 0 : i32
    %c0_i32_1 = arith.constant 0 : i32
    return %arg0, %1, %c0_i32, %c0_i32_0 : i32, i32, i32, i32
  }
  func.func @transform_2(%arg0: i32, %arg1: i32) -> (i32, i32) {
    %c0_i32 = arith.constant 0 : i32
    %c0_i32_0 = arith.constant 0 : i32
    %c0_i32_1 = arith.constant 0 : i32
    return %c0_i32, %c0_i32_0 : i32, i32
  }
  func.func @transform_3(%arg0: i32, %arg1: i32) -> (i32, i32) {
    %c0_i32 = arith.constant 0 : i32
    %c0_i32_0 = arith.constant 0 : i32
    %c0_i32_1 = arith.constant 0 : i32
    return %c0_i32, %c0_i32_0 : i32, i32
  }
  func.func @transform_4(%arg0: i32, %arg1: i32) -> (i32, i32) {
    %c0_i32 = arith.constant 0 : i32
    %c0_i32_0 = arith.constant 0 : i32
    %c0_i32_1 = arith.constant 0 : i32
    return %c0_i32, %c0_i32_0 : i32, i32
  }
  func.func @transform_5(%arg0: i32, %arg1: i32) -> (i32, i32) {
    %c1_i32 = arith.constant 1 : i32
    %0 = arith.muli %arg0, %c1_i32 : i32
    %1 = arith.addi %0, %arg1 : i32
    %c0_i32 = arith.constant 0 : i32
    %c0_i32_0 = arith.constant 0 : i32
    return %1, %c0_i32 : i32, i32
  }
}

</mosaic_0001>

<bundles_post_ra>
// kernel: tile.18
= control target key start
LH: loop header
LB: loop body
LE: loop exit
PB: predicated region body
PF: predicated region fallthrough
CT: control target
= control target key end

     0   :  { %s22_s0 = inlined_call_operand.vmem [shape: f32[32], index: 0, kind: input, shape index: {}]   ;;  %s23_s1 = inlined_call_operand.vmem [shape: f32[4,32], index: 1, kind: output, shape index: {}]  }
   0x1   :  { %v4_v0 = vld [vmem:[%s22_s0] ss:$0 sm:$0xff] }
   0x2   :  { %5 = vst [vmem:[%s23_s1] sm:$0xf] %v4_v0 }

// kernel: tile.19
= control target key start
LH: loop header
LB: loop body
LE: loop exit
PB: predicated region body
PF: predicated region fallthrough
CT: control target
= control target key end

     0   :  { %vm7_vm0 = vcmask 261120   ;;  %s37_s8 = smov 32   ;;  %s38_s9 = smov 64   ;;  %vm13_vm1 = vcmask 1048320   ;;  %vm19_vm2 = vcmask 785920   ;;  %vm25_vm3 = vcmask 523520   ;;  %s55_s0 = inlined_call_operand.vmem [shape: f32[4,32], index: 0, kind: input, shape index: {}]   ;;  %s56_s1 = inlined_call_operand.vmem [shape: f32[1,128], index: 1, kind: output, shape index: {}]  }
   0x1   :  { %v4_v0 = vld [vmem:[%s55_s0] sm:$0xf]  ;;  %s36_s0 = smov 96  }
   0x2   :  { %5 = vst [vmem:[#allocation1] sm:$0xf] %v4_v0 }
   0x9   :  { %v10_v1 = vld [vmem:[#allocation1 + $0x3] sm:$0x1]   ;;  %v22_v2 = vld [vmem:[#allocation1 + $0x1] sm:$0x1]   ;;  %v6_v3 = vld [vmem:[#allocation1] sm:$0x1]  }
   0xa   :  { %11 = vrot.lane.b32.xlu0 %v10_v1, %s36_s0  ;;  %23 = vrot.lane.b32.xlu1 %v22_v2, %s37_s8  ;;  %v16_v4 = vld [vmem:[#allocation1 + $0x2] sm:$0x1]   ;;  %8 = vst.msk [vmem:[#allocation0] sm:$0x1] %vm7_vm0, %v6_v3  }
   0xe   :  { %17 = vrot.lane.b32.xlu0 %v16_v4, %s38_s9 }
  0x7c   :  { %v12_v5 = vpop.permute.xlu0 %11   ;;  %v24_v6 = vpop.permute.xlu1 %23  }
  0x7d   :  { %14 = vst.msk [vmem:[#allocation0] sm:$0x1] %vm13_vm1, %v12_v5  }
  0x80   :  { %v18_v7 = vpop.permute.xlu0 %17  }
  0x81   :  { %20 = vst.msk [vmem:[#allocation0] sm:$0x1] %vm19_vm2, %v18_v7  }
  0x82   :  { %26 = vst.msk [vmem:[#allocation0] sm:$0x1] %vm25_vm3, %v24_v6  }
  0x89   :  { %v30_v8 = vld [vmem:[#allocation0] sm:$0x1] }
  0x8a   :  { %32 = vst [vmem:[%s56_s1] sm:$0x1] %v30_v8 }

// kernel: upsampler_block.3
= control target key start
LH: loop header
LB: loop body
LE: loop exit
PB: predicated region body
PF: predicated region fallthrough
CT: control target
= control target key end

     0   :  { %s1606_s18 = smov 0   ;;  %s1608_s19 = smov 0   ;;  %s2034_s0 = inlined_call_operand.vmem [shape: bf16[2,17,17,4], index: 0, kind: input, shape index: {}, may-alias: {0,1}]   ;;  %s2035_s1 = inlined_call_operand.vmem [shape: bf16[2,17,17,4], index: 1, kind: input, shape index: {}, may-alias: {0,1}]   ;;  %s2036_s2 = inlined_call_operand.vmem [shape: bf16[16,128], index: 2, kind: input, shape index: {}]   ;;  %s2037_s3 = inlined_call_operand.vmem [shape: f32[1,128], index: 3, kind: input, shape index: {}]   ;;  %s2038_s4 = inlined_call_operand.vmem [shape: f32[1,128], index: 4, kind: input, shape index: {}]   ;;  %s2039_s5 = inlined_call_operand.vmem [shape: f32[512,128], index: 5, kind: output, shape index: {}]  }
   0x1   :  { %s1610_s20 = smov 0  }
   0x2 LB: > { %s27_s21 = sadd.s32 1, %s1567_s19  ;;  %p1369_p0 = scmp.ge.s32.totalorder %s1571_s20, 1  ;;  %s1571_s20 = sphi %s1610_s20, %s15_s20   ;;  %s1567_s19 = sphi %s1608_s19, %s2041_s19   ;;  %s1563_s18 = sphi %s1606_s18, %s2040_s18  }
   0x3   : > { %p29_p1 = scmp.ge.s32.totalorder %s27_s21, 2  ;;  %p243_p2 = scmp.lt.s32.totalorder %s1571_s20, 3 }
   0x5   : > { %s2043_s21 = smov (%p29_p1, %s27_s21), 0  ;;  %p244_p3 = pnand %p1369_p0, %p243_p2 }
   0x6   : > { %p299_p4 = scmp.lt.s32.totalorder (!%p244_p3), %s1563_s18, 1  ;;  %vm515_vm0 = vsmask.f32 (!%p244_p3), 7424  ;;  %s1573_s27 = smov (!%p244_p3), 8   ;;  %vm824_vm1 = vcmask (!%p244_p3), 31744   ;;  %vm857_vm2 = vcmask (!%p244_p3), 64512  }
   0x7   : > { %247 = sbr.rel (%p244_p3) target bundleno = 451 (0x1c3), region = 40  ;;  %s1574_s28 = smov (!%p244_p3), 4   ;;  %vm890_vm3 = vcmask (!%p244_p3), 97280   ;;  %vm931_vm4 = vcmask (!%p244_p3), 130048  }
   0x8   : > { %s1575_s29 = smov (!%p244_p3), 12   ;;  %s1372_s11 = sshll.u32 (!%p244_p3), %s1563_s18, 5 }
   0x9   : > { %p329_p5 = scmp.lt.s32.totalorder (!%p244_p3), %s1372_s11, 63 }
   0xe   : > { %s1628_s22 = scalar_select %p299_p4, %s1563_s18, 1 }
   0xf   : > { %s2045_s11 = smov (!%p329_p5, %s1372_s11), 63 }
  0x10   : > { %s1484_s23 = smul.u32 204, %s1628_s22  ;;  %s1373_s16 = sshll.u32 %s2045_s11, 3 }
  0x11   : > { %s1931_s22 = scalar_lea.vmem %s2039_s5, %s1373_s16 }
  0x12   : > { %s1636_s26 = scalar_lea.vmem %s2034_s0, %s1484_s23  ;;  %s1732_s30 = sadd.s32 192, %s1484_s23 }
  0x13   : > { %v1639_v0 = vld [vmem:[%s1636_s26 + $0x6c] sm:$0xff]   ;;  %v1647_v2 = vld [vmem:[%s1636_s26 + $0x78] sm:$0xff]   ;;  %v1518_v6 = vld [vmem:[%s1636_s26 + $0x14] ss:$0 sps:$4 sm:$0x11]   ;;  %s1769_s8 = scalar_lea.vmem %s2035_s1, %s1732_s30 }
  0x14   : > { %v1642_v1 = vld [vmem:[%s1636_s26 + $0xc] sm:$0xff]   ;;  %761 = vrot.lane.b32.xlu1 %v1639_v0, %s1573_s27  ;;  %v625_v3 = vshrl.u32 %v1639_v0, 16  ;;  %v1653_v4 = vld [vmem:[%s1636_s26 + $0x18] sm:$0xff]   ;;  %v536_v9 = vshll.u32 %v1518_v6, 16  ;;  %v1661_v10 = vld [vmem:[%s1636_s26] sm:$0xff]   ;;  %v627_v13 = vshll.u32 %v1639_v0, 16 }
  0x15   : > { %745 = vrot.lane.b32.xlu0 %v1642_v1, %s1573_s27  ;;  %v529_v5 = vshrl.u32 %v1642_v1, 16  ;;  %v531_v7 = vshll.u32 %v1642_v1, 16  ;;  %v1520_v11 = vld [vmem:[%s1636_s26 + $0x8] ss:$0 sps:$4 sm:$0x11]   ;;  %v517_v16 = vshrl.u32 %v1661_v10, 16 }
  0x16   : > { %v1521_v12 = vld [vmem:[%s1636_s26 + $0x74] ss:$0 sps:$4 sm:$0x11]   ;;  %v538_v15 = vrot.slane %v536_v9, 1  ;;  %v519_v17 = vshll.u32 %v1661_v10, 16  ;;  %v1671_v18 = vld [vmem:[%s1636_s26 + $0x60] sm:$0xff]  }
  0x17   : > { %v533_v8 = vrot.slane %v531_v7, 1  ;;  %v524_v19 = vshll.u32 %v1520_v11, 16  ;;  %v629_v20 = vrot.slane %v627_v13, 1  ;;  %v632_v21 = vshll.u32 %v1521_v12, 16  ;;  %v1679_v30 = vld [vmem:[%s1636_s26 + $0x84] sm:$0xff]   ;;  %v1714_v9 = vld [vmem:[%s1636_s26 + $0x30] sm:$0xff]  }
  0x18   : > { %763 = vrot.lane.b32.xlu1 %v1647_v2, %s1573_s27  ;;  %v637_v22 = vshrl.u32 %v1647_v2, 16  ;;  %v521_v24 = vrot.slane %v519_v17, 1  ;;  %v1523_v25 = vld [vmem:[%s1636_s26 + $0x68] ss:$0 sps:$4 sm:$0x11]   ;;  %v613_v29 = vshrl.u32 %v1671_v18, 16 }
  0x19   : > { %747 = vrot.lane.b32.xlu0 %v1653_v4, %s1573_s27  ;;  %v534_v14 = vor.u32 %v533_v8, %v529_v5  ;;  %v526_v26 = vrot.slane %v524_v19, 1  ;;  %v630_v27 = vor.u32 %v629_v20, %v625_v3  ;;  %v634_v28 = vrot.slane %v632_v21, 1  ;;  %v1524_v34 = vld [vmem:[%s1636_s26 + $0x80] ss:$0 sps:$4 sm:$0x11]   ;;  %v1692_v46 = vld [vmem:[%s1636_s26 + $0x24] sm:$0xff]  }
  0x1a   : > { %v522_v31 = vor.u32 %v521_v24, %v517_v16  ;;  %v615_v32 = vshll.u32 %v1671_v18, 16  ;;  %v620_v33 = vshll.u32 %v1523_v25, 16  ;;  %v639_v35 = vshll.u32 %v1647_v2, 16  ;;  %v1525_v37 = vld [vmem:[%s1636_s26 + $0x20] ss:$0 sps:$4 sm:$0x11]  }
  0x1b   : > { %v539_v23 = vsel %vm515_vm0, %v534_v14, %v538_v15  ;;  %v635_v36 = vsel %vm515_vm0, %v630_v27, %v634_v28  ;;  %v541_v38 = vshrl.u32 %v1653_v4, 16  ;;  %v644_v43 = vshll.u32 %v1524_v34, 16  ;;  %v1527_v49 = vld [vmem:[%s1636_s26 + $0x8c] ss:$0 sps:$4 sm:$0x11]   ;;  %v1711_v8 = vld [vmem:[%s1636_s26 + $0x90] sm:$0xff]  }
  0x1c   : > { %710 = vrot.lane.b32.xlu1 %v539_v23, %s1574_s28  ;;  %v527_v39 = vsel %vm515_vm0, %v522_v31, %v526_v26  ;;  %v617_v40 = vrot.slane %v615_v32, 1  ;;  %v622_v41 = vrot.slane %v620_v33, 1  ;;  %v641_v42 = vrot.slane %v639_v35, 1  ;;  %v1529_v57 = vld [vmem:[%s1636_s26 + $0x2c] ss:$0 sps:$4 sm:$0x11]  }
  0x1d   : > { %708 = vrot.lane.b32.xlu0 %v527_v39, %s1574_s28  ;;  %v543_v44 = vshll.u32 %v1653_v4, 16  ;;  %v548_v45 = vshll.u32 %v1525_v37, 16  ;;  %v651_v50 = vshll.u32 %v1679_v30, 16  ;;  %v646_v51 = vrot.slane %v644_v43, 1  ;;  %v1722_v16 = vld [vmem:[%s1636_s26 + $0x9c] sm:$0xff]   ;;  %v1728_v20 = vld [vmem:[%s1636_s26 + $0x48] sm:$0xff]  }
  0x1e   : > { %v618_v47 = vor.u32 %v617_v40, %v613_v29  ;;  %v642_v48 = vor.u32 %v641_v42, %v637_v22  ;;  %v649_v55 = vshrl.u32 %v1679_v30, 16  ;;  %v656_v60 = vshll.u32 %v1527_v49, 16  ;;  %v1532_v11 = vld [vmem:[%s1636_s26 + $0x98] ss:$0 sps:$4 sm:$0x11]   ;;  %v1756_v42 = vld [vmem:[%s1636_s26 + $0x3c] sm:$0xff]  }
  0x1f   : > { %v545_v52 = vrot.slane %v543_v44, 1  ;;  %v550_v54 = vrot.slane %v548_v45, 1  ;;  %v653_v56 = vrot.slane %v651_v50, 1  ;;  %v555_v61 = vshll.u32 %v1692_v46, 16  ;;  %v1740_v27 = vld [vmem:[%s1636_s26 + $0xb4] sm:$0xff]  }
  0x20   : > { %726 = vrot.lane.b32.xlu1 %v635_v36, %s1574_s28  ;;  %v1697_v53 = vsel %vm515_vm0, %v618_v47, %v622_v41  ;;  %v647_v58 = vsel %vm515_vm0, %v642_v48, %v646_v51  ;;  %v553_v63 = vshrl.u32 %v1692_v46, 16  ;;  %v658_v5 = vrot.slane %v656_v60, 1  ;;  %v1541_v28 = vld [vmem:[%s1636_s26 + $0x50] ss:$0 sps:$4 sm:$0x11]   ;;  %v1746_v32 = vld [vmem:[%s1636_s26 + $0x54] sm:$0xff]  }
  0x21   : > { %724 = vrot.lane.b32.xlu0 %v1697_v53, %s1574_s28  ;;  %v546_v59 = vor.u32 %v545_v52, %v541_v38  ;;  %v654_v62 = vor.u32 %v653_v56, %v649_v55  ;;  %v557_v6 = vrot.slane %v555_v61, 1  ;;  %v560_v7 = vshll.u32 %v1529_v57, 16  ;;  %v1543_v40 = vld [vmem:[%s1636_s26 + $0xbc] ss:$0 sps:$4 sm:$0x11]  }
  0x22   : > { %v663_v15 = vshll.u32 %v1711_v8, 16  ;;  %v668_v17 = vshll.u32 %v1532_v11, 16  ;;  %v567_v19 = vshll.u32 %v1714_v9, 16  ;;  %v661_v22 = vshrl.u32 %v1711_v8, 16 }
  0x23   : > { %v551_v3 = vsel %vm515_vm0, %v546_v59, %v550_v54  ;;  %v659_v12 = vsel %vm515_vm0, %v654_v62, %v658_v5  ;;  %v558_v13 = vor.u32 %v557_v6, %v553_v63  ;;  %v562_v14 = vrot.slane %v560_v7, 1  ;;  %v1535_v41 = vld [vmem:[%s1636_s26 + $0xa4] ss:$0 sps:$4 sm:$0x11]  }
  0x24   : > { %808 = vrot.lane.b32.xlu1 %v635_v36, %s1575_s29  ;;  %v665_v24 = vrot.slane %v663_v15, 1  ;;  %v565_v25 = vshrl.u32 %v1714_v9, 16  ;;  %v675_v26 = vshll.u32 %v1722_v16, 16  ;;  %v589_v29 = vshrl.u32 %v1728_v20, 16 }
  0x25   : > { %792 = vrot.lane.b32.xlu0 %v539_v23, %s1575_s29  ;;  %v563_v21 = vsel %vm515_vm0, %v558_v13, %v562_v14  ;;  %v1533_v23 = vld [vmem:[%s1636_s26 + $0x38] ss:$0 sps:$4 sm:$0x11]   ;;  %v591_v31 = vshll.u32 %v1728_v20, 16  ;;  %v670_v33 = vrot.slane %v668_v17, 1  ;;  %v569_v34 = vrot.slane %v567_v19, 1 }
  0x26   : > { %v596_v36 = vshll.u32 %v1541_v28, 16  ;;  %v697_v37 = vshrl.u32 %v1740_v27, 16  ;;  %v699_v38 = vshll.u32 %v1740_v27, 16  ;;  %v572_v39 = vshll.u32 %v1533_v23, 16 }
  0x27   : > { %v593_v35 = vrot.slane %v591_v31, 1  ;;  %v704_v47 = vshll.u32 %v1543_v40, 16  ;;  %v1545_v48 = vld [vmem:[%s1636_s26 + $0x5c] ss:$0 sps:$4 sm:$0x11]   ;;  %v601_v49 = vshrl.u32 %v1746_v32, 16  ;;  %v666_v51 = vor.u32 %v665_v24, %v661_v22 }
  0x28   : > { %810 = vrot.lane.b32.xlu1 %v647_v58, %s1575_s29  ;;  %v598_v44 = vrot.slane %v596_v36, 1  ;;  %v701_v45 = vrot.slane %v699_v38, 1  ;;  %v603_v50 = vshll.u32 %v1746_v32, 16  ;;  %v608_v57 = vshll.u32 %v1545_v48, 16 }
  0x29   : > { %794 = vrot.lane.b32.xlu0 %v551_v3, %s1575_s29  ;;  %v594_v43 = vor.u32 %v593_v35, %v589_v29  ;;  %v706_v55 = vrot.slane %v704_v47, 1  ;;  %v673_v59 = vshrl.u32 %v1722_v16, 16  ;;  %v677_v60 = vrot.slane %v675_v26, 1  ;;  %v1537_v11 = vld [vmem:[%s1636_s26 + $0x44] ss:$0 sps:$4 sm:$0x11]  }
  0x2a   : > { %v702_v54 = vor.u32 %v701_v45, %v697_v37  ;;  %v605_v56 = vrot.slane %v603_v50, 1  ;;  %v570_v61 = vor.u32 %v569_v34, %v565_v25  ;;  %v671_v5 = vsel %vm515_vm0, %v666_v51, %v670_v33  ;;  %v1540_v29 = vld [vmem:[%s1636_s26 + $0xb0] ss:$0 sps:$4 sm:$0x11]  }
  0x2b   : > { %v599_v52 = vsel %vm515_vm0, %v594_v43, %v598_v44  ;;  %v574_v6 = vrot.slane %v572_v39, 1  ;;  %v680_v7 = vshll.u32 %v1535_v41, 16  ;;  %v579_v13 = vshll.u32 %v1756_v42, 16  ;;  %v1546_v39 = vld [vmem:[%s1769_s8] sm:$0xff]  }
  0x2c   : > { %728 = vrot.lane.b32.xlu1 %v647_v58, %s1574_s28  ;;  %v1548_v58 = vld [vmem:[%s2036_s2] sm:$0xff]   ;;  %v707_v62 = vsel %vm515_vm0, %v702_v54, %v706_v55  ;;  %v606_v63 = vor.u32 %v605_v56, %v601_v49  ;;  %v577_v15 = vshrl.u32 %v1756_v42, 16  ;;  %v584_v23 = vshll.u32 %v1537_v11, 16  ;;  %v1547_v41 = vld [vmem:[%s1769_s8 + $0x8] ss:$0 sps:$4 sm:$0x11]  }
  0x2d   : > { %712 = vrot.lane.b32.xlu0 %v551_v3, %s1574_s28  ;;  %v610_v3 = vrot.slane %v608_v57, 1  ;;  %1448 = vmatprep.subr.bf16.mxu0 %v1548_v58  ;;  %v575_v17 = vsel %vm515_vm0, %v570_v61, %v574_v6  ;;  %v682_v19 = vrot.slane %v680_v7, 1  ;;  %v581_v22 = vrot.slane %v579_v13, 1 }
  0x2e   : > { %1482 = vmatprep.subr.bf16.mxu1 %v1548_v58  ;;  %1449 = vmatpush3.bf16.msra.mxu0 %v1548_v58  ;;  %v586_v26 = vrot.slane %v584_v23, 1  ;;  %v692_v35 = vshll.u32 %v1540_v29, 16  ;;  %v783_v40 = vshll.u32 %v1546_v39, 16  ;;  %v781_v43 = vshrl.u32 %v1546_v39, 16 }
  0x2f   : > { %v611_v14 = vsel %vm515_vm0, %v606_v63, %v610_v3  ;;  %1483 = vmatpush3.bf16.msra.mxu1 %v1548_v58  ;;  %v582_v25 = vor.u32 %v581_v22, %v577_v15  ;;  %v788_v45 = vshll.u32 %v1547_v41, 16 }
  0x30   : > { %730 = vrot.lane.b32.xlu1 %v659_v12, %s1574_s28  ;;  %v694_v37 = vrot.slane %v692_v35, 1  ;;  %v785_v44 = vrot.slane %v783_v40, 1 }
  0x31   : > { %714 = vrot.lane.b32.xlu0 %v563_v21, %s1574_s28  ;;  %v587_v28 = vsel %vm515_vm0, %v582_v25, %v586_v26  ;;  %v790_v48 = vrot.slane %v788_v45, 1 }
  0x32   : > { %v786_v47 = vor.u32 %v785_v44, %v781_v43 }
  0x34   : > { %765 = vrot.lane.b32.xlu1 %v1679_v30, %s1573_s27  ;;  %v791_v49 = vsel %vm515_vm0, %v786_v47, %v790_v48 }
  0x35   : > { %749 = vrot.lane.b32.xlu0 %v1692_v46, %s1573_s27 }
  0x38   : > { %767 = vrot.lane.b32.xlu1 %v1711_v8, %s1573_s27 }
  0x39   : > { %751 = vrot.lane.b32.xlu0 %v1714_v9, %s1573_s27 }
  0x3c   : > { %812 = vrot.lane.b32.xlu1 %v659_v12, %s1575_s29  ;;  %v678_v12 = vor.u32 %v677_v60, %v673_v59 }
  0x3d   : > { %796 = vrot.lane.b32.xlu0 %v563_v21, %s1575_s29  ;;  %v1792_v21 = vld [vmem:[%s1636_s26 + $0xa8] sm:$0xff]  }
  0x3e   : > { %v683_v24 = vsel %vm515_vm0, %v678_v12, %v682_v19  ;;  %v687_v31 = vshll.u32 %v1792_v21, 16  ;;  %v685_v33 = vshrl.u32 %v1792_v21, 16 }
  0x40   : > { %814 = vrot.lane.b32.xlu1 %v671_v5, %s1575_s29  ;;  %v689_v34 = vrot.slane %v687_v31, 1 }
  0x41   : > { %798 = vrot.lane.b32.xlu0 %v575_v17, %s1575_s29 }
  0x42   : > { %v690_v36 = vor.u32 %v689_v34, %v685_v33 }
  0x44   : > { %732 = vrot.lane.b32.xlu1 %v671_v5, %s1574_s28  ;;  %v695_v38 = vsel %vm515_vm0, %v690_v36, %v694_v37 }
  0x45   : > { %716 = vrot.lane.b32.xlu0 %v575_v17, %s1574_s28 }
  0x48   : > { %734 = vrot.lane.b32.xlu1 %v683_v24, %s1574_s28 }
  0x49   : > { %718 = vrot.lane.b32.xlu0 %v587_v28, %s1574_s28 }
  0x4c   : > { %769 = vrot.lane.b32.xlu1 %v1722_v16, %s1573_s27 }
  0x4d   : > { %753 = vrot.lane.b32.xlu0 %v1756_v42, %s1573_s27 }
  0x50   : > { %771 = vrot.lane.b32.xlu1 %v1792_v21, %s1573_s27 }
  0x51   : > { %755 = vrot.lane.b32.xlu0 %v1728_v20, %s1573_s27 }
  0x54   : > { %816 = vrot.lane.b32.xlu1 %v683_v24, %s1575_s29 }
  0x55   : > { %800 = vrot.lane.b32.xlu0 %v587_v28, %s1575_s29 }
  0x58   : > { %818 = vrot.lane.b32.xlu1 %v695_v38, %s1575_s29 }
  0x59   : > { %802 = vrot.lane.b32.xlu0 %v599_v52, %s1575_s29 }
  0x5c   : > { %736 = vrot.lane.b32.xlu1 %v695_v38, %s1574_s28 }
  0x5d   : > { %720 = vrot.lane.b32.xlu0 %v599_v52, %s1574_s28 }
  0x60   : > { %738 = vrot.lane.b32.xlu1 %v707_v62, %s1574_s28 }
  0x61   : > { %722 = vrot.lane.b32.xlu0 %v611_v14, %s1574_s28 }
  0x64   : > { %773 = vrot.lane.b32.xlu1 %v1740_v27, %s1573_s27 }
  0x65   : > { %757 = vrot.lane.b32.xlu0 %v1746_v32, %s1573_s27 }
  0x68   : > { %775 = vrot.lane.b32.xlu1 %v1546_v39, %s1573_s27 }
  0x69   : > { %759 = vrot.lane.b32.xlu0 %v1671_v18, %s1573_s27 }
  0x6c   : > { %820 = vrot.lane.b32.xlu1 %v707_v62, %s1575_s29 }
  0x6d   : > { %804 = vrot.lane.b32.xlu0 %v611_v14, %s1575_s29 }
  0x70   : > { %822 = vrot.lane.b32.xlu1 %v791_v49, %s1575_s29 }
  0x71   : > { %806 = vrot.lane.b32.xlu0 %v1697_v53, %s1575_s29 }
  0x86   : > { %v762_v50 = vpop.permute.xlu1 %761 }
  0x87   : > { %v746_v51 = vpop.permute.xlu0 %745 }
  0x8a   : > { %v764_v52 = vpop.permute.xlu1 %763 }
  0x8b   : > { %v748_v54 = vpop.permute.xlu0 %747 }
  0x8e   : > { %v711_v55 = vpop.permute.xlu1 %710 }
  0x8f   : > { %v709_v56 = vpop.permute.xlu0 %708 }
  0x90   : > { %v826_v60 = vsel %vm824_vm1, %v1661_v10, %v709_v56  ;;  %v828_v10 = vsel %vm824_vm1, %v1642_v1, %v711_v55 }
  0x91   : > { %v859_v5 = vsel %vm857_vm2, %v826_v60, %v746_v51  ;;  %v861_v11 = vsel %vm857_vm2, %v828_v10, %v748_v54 }
  0x92   : > { %v727_v57 = vpop.permute.xlu1 %726 }
  0x93   : > { %v725_v58 = vpop.permute.xlu0 %724  ;;  %v844_v61 = vsel %vm824_vm1, %v1639_v0, %v727_v57 }
  0x94   : > { %v842_v53 = vsel %vm824_vm1, %v1671_v18, %v725_v58  ;;  %v877_v6 = vsel %vm857_vm2, %v844_v61, %v764_v52 }
  0x95   : > { %v875_v62 = vsel %vm857_vm2, %v842_v53, %v762_v50 }
  0x96   : > { %v809_v59 = vpop.permute.xlu1 %808 }
  0x97   : > { %v908_v63 = vsel %vm890_vm3, %v875_v62, %v809_v59  ;;  %v793_v3 = vpop.permute.xlu0 %792 }
  0x98   : > { %1466 = vmatprep.mubr.msk.bf16.mxu1 %vm931_vm4, %v908_v63  ;;  %v892_v0 = vsel %vm890_vm3, %v859_v5, %v793_v3 }
  0x99   : > { %1450 = vmatprep.mubr.msk.bf16.mxu0 %vm931_vm4, %v892_v0 }
  0x9a   : > { %v811_v7 = vpop.permute.xlu1 %810 }
  0x9b   : > { %v910_v18 = vsel %vm890_vm3, %v877_v6, %v811_v7  ;;  %v795_v13 = vpop.permute.xlu0 %794 }
  0x9c   : > { %1467 = vmatmul.mubr.msk.bf16.vlgmr.msra.gmra.mrb[0].mxu1 %vm931_vm4, %v910_v18  ;;  %v894_v12 = vsel %vm890_vm3, %v861_v11, %v795_v13 }
  0x9d   : > { %1451 = vmatmul.mubr.msk.bf16.vlgmr.msra.gmra.mrb[0].mxu0 %vm931_vm4, %v894_v12 }
  0x9e   : > { %v729_v14 = vpop.permute.xlu1 %728 }
  0x9f   : > { %v713_v15 = vpop.permute.xlu0 %712  ;;  %v846_v24 = vsel %vm824_vm1, %v1647_v2, %v729_v14 }
  0xa0   : > { %v830_v31 = vsel %vm824_vm1, %v1653_v4, %v713_v15 }
  0xa2   : > { %v731_v17 = vpop.permute.xlu1 %730 }
  0xa3   : > { %v715_v19 = vpop.permute.xlu0 %714  ;;  %v848_v33 = vsel %vm824_vm1, %v1679_v30, %v731_v17 }
  0xa4   : > { %v832_v4 = vsel %vm824_vm1, %v1692_v46, %v715_v19 }
  0xa6   : > { %v766_v1 = vpop.permute.xlu1 %765 }
  0xa7   : > { %v750_v22 = vpop.permute.xlu0 %749  ;;  %v879_v25 = vsel %vm857_vm2, %v846_v24, %v766_v1 }
  0xa8   : > { %v863_v34 = vsel %vm857_vm2, %v830_v31, %v750_v22 }
  0xaa   : > { %v768_v23 = vpop.permute.xlu1 %767 }
  0xab   : > { %v752_v26 = vpop.permute.xlu0 %751  ;;  %v881_v35 = vsel %vm857_vm2, %v848_v33, %v768_v23 }
  0xac   : > { %v865_v39 = vsel %vm857_vm2, %v832_v4, %v752_v26  ;;  %v1917_v26 = vld [vmem:[%s2037_s3] ss:$0 sm:$0xff] }
  0xae   : > { %v813_v28 = vpop.permute.xlu1 %812 }
  0xaf   : > { %v912_v29 = vsel %vm890_vm3, %v879_v25, %v813_v28  ;;  %v797_v36 = vpop.permute.xlu0 %796  ;;  %v1922_v28 = vld [vmem:[%s2038_s4] ss:$0 sm:$0xff] }
  0xb0   : > { %1470 = vmatprep.mubr.msk.bf16.mxu1 %vm931_vm4, %v912_v29  ;;  %v896_v37 = vsel %vm890_vm3, %v863_v34, %v797_v36 }
  0xb1   : > { %1454 = vmatprep.mubr.msk.bf16.mxu0 %vm931_vm4, %v896_v37 }
  0xb2   : > { %v815_v2 = vpop.permute.xlu1 %814 }
  0xb3   : > { %v914_v38 = vsel %vm890_vm3, %v881_v35, %v815_v2  ;;  %v799_v30 = vpop.permute.xlu0 %798 }
  0xb4   : > { %1471 = vmatmul.mubr.msk.bf16.gmra.mrb[4].mxu1 %vm931_vm4, %v914_v38  ;;  %v898_v41 = vsel %vm890_vm3, %v865_v39, %v799_v30 }
  0xb5   : > { %1455 = vmatmul.mubr.msk.bf16.gmra.mrb[4].mxu0 %vm931_vm4, %v898_v41 }
  0xb6   : > { %v733_v40 = vpop.permute.xlu1 %732 }
  0xb7   : > { %v717_v43 = vpop.permute.xlu0 %716  ;;  %v850_v50 = vsel %vm824_vm1, %v1711_v8, %v733_v40 }
  0xb8   : > { %v834_v55 = vsel %vm824_vm1, %v1714_v9, %v717_v43 }
  0xba   : > { %v735_v44 = vpop.permute.xlu1 %734 }
  0xbb   : > { %v719_v45 = vpop.permute.xlu0 %718  ;;  %v852_v56 = vsel %vm824_vm1, %v1722_v16, %v735_v44 }
  0xbc   : > { %v836_v9 = vsel %vm824_vm1, %v1756_v42, %v719_v45 }
  0xbe   : > { %v770_v47 = vpop.permute.xlu1 %769 }
  0xbf   : > { %v754_v48 = vpop.permute.xlu0 %753  ;;  %v883_v51 = vsel %vm857_vm2, %v850_v50, %v770_v47 }
  0xc0   : > { %v867_v57 = vsel %vm857_vm2, %v834_v55, %v754_v48 }
  0xc2   : > { %v772_v49 = vpop.permute.xlu1 %771 }
  0xc3   : > { %v756_v46 = vpop.permute.xlu0 %755  ;;  %v885_v58 = vsel %vm857_vm2, %v852_v56, %v772_v49 }
  0xc4   : > { %v869_v53 = vsel %vm857_vm2, %v836_v9, %v756_v46 }
  0xc6   : > { %v817_v52 = vpop.permute.xlu1 %816 }
  0xc7   : > { %v916_v54 = vsel %vm890_vm3, %v883_v51, %v817_v52  ;;  %v801_v59 = vpop.permute.xlu0 %800 }
  0xc8   : > { %1474 = vmatprep.mubr.msk.bf16.mxu1 %vm931_vm4, %v916_v54  ;;  %v900_v60 = vsel %vm890_vm3, %v867_v57, %v801_v59 }
  0xc9   : > { %1458 = vmatprep.mubr.msk.bf16.mxu0 %vm931_vm4, %v900_v60 }
  0xca   : > { %v819_v8 = vpop.permute.xlu1 %818 }
  0xcb   : > { %v918_v61 = vsel %vm890_vm3, %v885_v58, %v819_v8  ;;  %v803_v16 = vpop.permute.xlu0 %802 }
  0xcc   : > { %1475 = vmatmul.mubr.msk.bf16.gmra.mrb[8].mxu1 %vm931_vm4, %v918_v61  ;;  %v902_v63 = vsel %vm890_vm3, %v869_v53, %v803_v16 }
  0xcd   : > { %1459 = vmatmul.mubr.msk.bf16.gmra.mrb[8].mxu0 %vm931_vm4, %v902_v63 }
  0xce   : > { %v737_v62 = vpop.permute.xlu1 %736 }
  0xcf   : > { %v721_v3 = vpop.permute.xlu0 %720  ;;  %v854_v18 = vsel %vm824_vm1, %v1792_v21, %v737_v62 }
  0xd0   : > { %v838_v12 = vsel %vm824_vm1, %v1728_v20, %v721_v3 }
  0xd2   : > { %v739_v5 = vpop.permute.xlu1 %738 }
  0xd3   : > { %v723_v6 = vpop.permute.xlu0 %722  ;;  %v856_v15 = vsel %vm824_vm1, %v1740_v27, %v739_v5 }
  0xd4   : > { %v840_v20 = vsel %vm824_vm1, %v1746_v32, %v723_v6 }
  0xd6   : > { %v774_v7 = vpop.permute.xlu1 %773 }
  0xd7   : > { %v758_v10 = vpop.permute.xlu0 %757  ;;  %v887_v11 = vsel %vm857_vm2, %v854_v18, %v774_v7 }
  0xd8   : > { %v871_v17 = vsel %vm857_vm2, %v838_v12, %v758_v10 }
  0xda   : > { %v776_v0 = vpop.permute.xlu1 %775 }
  0xdb   : > { %v760_v42 = vpop.permute.xlu0 %759  ;;  %v889_v19 = vsel %vm857_vm2, %v856_v15, %v776_v0 }
  0xdc   : > { %v873_v24 = vsel %vm857_vm2, %v840_v20, %v760_v42 }
  0xde   : > { %v821_v13 = vpop.permute.xlu1 %820 }
  0xdf   : > { %v920_v14 = vsel %vm890_vm3, %v887_v11, %v821_v13  ;;  %v805_v21 = vpop.permute.xlu0 %804 }
  0xe0   : > { %1478 = vmatprep.mubr.msk.bf16.mxu1 %vm931_vm4, %v920_v14  ;;  %v904_v22 = vsel %vm890_vm3, %v871_v17, %v805_v21 }
  0xe1   : > { %1462 = vmatprep.mubr.msk.bf16.mxu0 %vm931_vm4, %v904_v22 }
  0xe2   : > { %v823_v1 = vpop.permute.xlu1 %822 }
  0xe3   : > { %v922_v23 = vsel %vm890_vm3, %v889_v19, %v823_v1  ;;  %v807_v27 = vpop.permute.xlu0 %806 }
  0xe4   : > { %1479 = vmatmul.mubr.msk.bf16.gmra.mrb[12].mxu1 %vm931_vm4, %v922_v23  ;;  %v906_v25 = vsel %vm890_vm3, %v873_v24, %v807_v27 }
  0xe5   : > { %1463 = vmatmul.mubr.msk.bf16.gmra.mrb[12].mxu0 %vm931_vm4, %v906_v25 }
 0x16f   : > { %v1468_v32 = vpop.f32.mrb[0].mxu1 }
 0x170   : > { %v1150_v29 = vmul.f32 %v1468_v32, %v1917_v26  ;;  %v1062_v31 = vpop.f32.mrb[1].mxu1  ;;  %v1452_v37 = vpop.f32.mrb[0].mxu0 }
 0x171   : > { %v1148_v33 = vmul.f32 %v1917_v26, %v1062_v31  ;;  %v1469_v34 = vpop.f32.mrb[2].mxu1  ;;  %v1134_v39 = vmul.f32 %v1452_v37, %v1917_v26  ;;  %v998_v40 = vpop.f32.mrb[1].mxu0 }
 0x172   : > { %v1189_v35 = vadd.f32 %v1922_v28, %v1150_v29  ;;  %v1151_v36 = vmul.f32 %v1469_v34, %v1917_v26  ;;  %v1065_v2 = vpop.f32.mrb[3].mxu1  ;;  %v1132_v43 = vmul.f32 %v1917_v26, %v998_v40  ;;  %v1453_v45 = vpop.f32.mrb[2].mxu0 }
 0x173   : > { %v1187_v38 = vadd.f32 %v1922_v28, %v1148_v33  ;;  %v1149_v4 = vmul.f32 %v1917_v26, %v1065_v2  ;;  %v1173_v48 = vadd.f32 %v1922_v28, %v1134_v39  ;;  %v1135_v49 = vmul.f32 %v1453_v45, %v1917_v26  ;;  %v1001_v51 = vpop.f32.mrb[3].mxu0 }
 0x174   : > { %v1221_v30 = vmax.f32 %v1189_v35, 0.0  ;;  %v1190_v41 = vadd.f32 %v1922_v28, %v1151_v36  ;;  %v1171_v46 = vadd.f32 %v1922_v28, %v1132_v43  ;;  %v1133_v52 = vmul.f32 %v1917_v26, %v1001_v51 }
 0x175   : > { %v1219_v44 = vmax.f32 %v1187_v38, 0.0  ;;  %v1188_v47 = vadd.f32 %v1922_v28, %v1149_v4  ;;  %v1205_v55 = vmax.f32 %v1173_v48, 0.0  ;;  %v1174_v56 = vadd.f32 %v1922_v28, %v1135_v49 }
 0x176   : > { %1253 = vst [vmem:[%s1931_s22 + $0x90] sm:$0xff] %v1221_v30  ;;  %v1222_v50 = vmax.f32 %v1190_v41, 0.0  ;;  %v1203_v57 = vmax.f32 %v1171_v46, 0.0  ;;  %v1172_v58 = vadd.f32 %v1922_v28, %v1133_v52 }
 0x177   : > { %1251 = vst [vmem:[%s1931_s22 + $0x80] sm:$0xff] %v1219_v44  ;;  %v1220_v54 = vmax.f32 %v1188_v47, 0.0  ;;  %1237 = vst [vmem:[%s1931_s22 + $0x10] sm:$0xff] %v1205_v55  ;;  %v1206_v59 = vmax.f32 %v1174_v56, 0.0 }
 0x178   : > { %1254 = vst [vmem:[%s1931_s22 + $0x98] sm:$0xff] %v1222_v50  ;;  %1235 = vst [vmem:[%s1931_s22] sm:$0xff] %v1203_v57  ;;  %v1204_v8 = vmax.f32 %v1172_v58, 0.0 }
 0x179   : > { %1252 = vst [vmem:[%s1931_s22 + $0x88] sm:$0xff] %v1220_v54  ;;  %1238 = vst [vmem:[%s1931_s22 + $0x18] sm:$0xff] %v1206_v59 }
 0x17a   : > { %1236 = vst [vmem:[%s1931_s22 + $0x8] sm:$0xff] %v1204_v8 }
 0x187   : > { %v1472_v60 = vpop.f32.mrb[4].mxu1 }
 0x188   : > { %v1154_v61 = vmul.f32 %v1472_v60, %v1917_v26  ;;  %v1078_v9 = vpop.f32.mrb[5].mxu1  ;;  %v1456_v5 = vpop.f32.mrb[4].mxu0 }
 0x189   : > { %v1152_v53 = vmul.f32 %v1917_v26, %v1078_v9  ;;  %v1473_v16 = vpop.f32.mrb[6].mxu1  ;;  %v1138_v10 = vmul.f32 %v1456_v5, %v1917_v26  ;;  %v1014_v18 = vpop.f32.mrb[5].mxu0 }
 0x18a   : > { %v1193_v62 = vadd.f32 %v1922_v28, %v1154_v61  ;;  %v1155_v63 = vmul.f32 %v1473_v16, %v1917_v26  ;;  %v1081_v3 = vpop.f32.mrb[7].mxu1  ;;  %v1136_v42 = vmul.f32 %v1917_v26, %v1014_v18  ;;  %v1457_v14 = vpop.f32.mrb[6].mxu0 }
 0x18b   : > { %v1191_v6 = vadd.f32 %v1922_v28, %v1152_v53  ;;  %v1153_v7 = vmul.f32 %v1917_v26, %v1081_v3  ;;  %v1177_v15 = vadd.f32 %v1922_v28, %v1138_v10  ;;  %v1139_v17 = vmul.f32 %v1457_v14, %v1917_v26  ;;  %v1017_v21 = vpop.f32.mrb[7].mxu0 }
 0x18c   : > { %v1225_v0 = vmax.f32 %v1193_v62, 0.0  ;;  %v1194_v11 = vadd.f32 %v1922_v28, %v1155_v63  ;;  %v1175_v1 = vadd.f32 %v1922_v28, %v1136_v42  ;;  %v1137_v22 = vmul.f32 %v1917_v26, %v1017_v21 }
 0x18d   : > { %v1223_v13 = vmax.f32 %v1191_v6, 0.0  ;;  %v1192_v12 = vadd.f32 %v1922_v28, %v1153_v7  ;;  %v1209_v20 = vmax.f32 %v1177_v15, 0.0  ;;  %v1178_v24 = vadd.f32 %v1922_v28, %v1139_v17 }
 0x18e   : > { %1257 = vst [vmem:[%s1931_s22 + $0xb0] sm:$0xff] %v1225_v0  ;;  %v1226_v19 = vmax.f32 %v1194_v11, 0.0  ;;  %v1207_v27 = vmax.f32 %v1175_v1, 0.0  ;;  %v1176_v25 = vadd.f32 %v1922_v28, %v1137_v22 }
 0x18f   : > { %1255 = vst [vmem:[%s1931_s22 + $0xa0] sm:$0xff] %v1223_v13  ;;  %v1224_v23 = vmax.f32 %v1192_v12, 0.0  ;;  %1241 = vst [vmem:[%s1931_s22 + $0x30] sm:$0xff] %v1209_v20  ;;  %v1210_v32 = vmax.f32 %v1178_v24, 0.0 }
 0x190   : > { %1258 = vst [vmem:[%s1931_s22 + $0xb8] sm:$0xff] %v1226_v19  ;;  %1239 = vst [vmem:[%s1931_s22 + $0x20] sm:$0xff] %v1207_v27  ;;  %v1208_v29 = vmax.f32 %v1176_v25, 0.0 }
 0x191   : > { %1256 = vst [vmem:[%s1931_s22 + $0xa8] sm:$0xff] %v1224_v23  ;;  %1242 = vst [vmem:[%s1931_s22 + $0x38] sm:$0xff] %v1210_v32 }
 0x192   : > { %1240 = vst [vmem:[%s1931_s22 + $0x28] sm:$0xff] %v1208_v29 }
 0x19f   : > { %v1476_v31 = vpop.f32.mrb[8].mxu1 }
 0x1a0   : > { %v1158_v33 = vmul.f32 %v1476_v31, %v1917_v26  ;;  %v1094_v34 = vpop.f32.mrb[9].mxu1  ;;  %v1460_v4 = vpop.f32.mrb[8].mxu0 }
 0x1a1   : > { %v1156_v35 = vmul.f32 %v1917_v26, %v1094_v34  ;;  %v1477_v36 = vpop.f32.mrb[10].mxu1  ;;  %v1142_v40 = vmul.f32 %v1460_v4, %v1917_v26  ;;  %v1030_v43 = vpop.f32.mrb[9].mxu0 }
 0x1a2   : > { %v1197_v2 = vadd.f32 %v1922_v28, %v1158_v33  ;;  %v1159_v37 = vmul.f32 %v1477_v36, %v1917_v26  ;;  %v1097_v38 = vpop.f32.mrb[11].mxu1  ;;  %v1140_v45 = vmul.f32 %v1917_v26, %v1030_v43  ;;  %v1461_v48 = vpop.f32.mrb[10].mxu0 }
 0x1a3   : > { %v1195_v39 = vadd.f32 %v1922_v28, %v1156_v35  ;;  %v1157_v30 = vmul.f32 %v1917_v26, %v1097_v38  ;;  %v1181_v50 = vadd.f32 %v1922_v28, %v1142_v40  ;;  %v1143_v51 = vmul.f32 %v1461_v48, %v1917_v26  ;;  %v1033_v52 = vpop.f32.mrb[11].mxu0 }
 0x1a4   : > { %v1229_v41 = vmax.f32 %v1197_v2, 0.0  ;;  %v1198_v44 = vadd.f32 %v1922_v28, %v1159_v37  ;;  %v1179_v54 = vadd.f32 %v1922_v28, %v1140_v45  ;;  %v1141_v55 = vmul.f32 %v1917_v26, %v1033_v52 }
 0x1a5   : > { %v1227_v47 = vmax.f32 %v1195_v39, 0.0  ;;  %v1196_v49 = vadd.f32 %v1922_v28, %v1157_v30  ;;  %v1213_v57 = vmax.f32 %v1181_v50, 0.0  ;;  %v1182_v58 = vadd.f32 %v1922_v28, %v1143_v51 }
 0x1a6   : > { %1261 = vst [vmem:[%s1931_s22 + $0xd0] sm:$0xff] %v1229_v41  ;;  %v1230_v46 = vmax.f32 %v1198_v44, 0.0  ;;  %v1211_v59 = vmax.f32 %v1179_v54, 0.0  ;;  %v1180_v8 = vadd.f32 %v1922_v28, %v1141_v55 }
 0x1a7   : > { %1259 = vst [vmem:[%s1931_s22 + $0xc0] sm:$0xff] %v1227_v47  ;;  %v1228_v56 = vmax.f32 %v1196_v49, 0.0  ;;  %1245 = vst [vmem:[%s1931_s22 + $0x50] sm:$0xff] %v1213_v57  ;;  %v1214_v60 = vmax.f32 %v1182_v58, 0.0 }
 0x1a8   : > { %1262 = vst [vmem:[%s1931_s22 + $0xd8] sm:$0xff] %v1230_v46  ;;  %1243 = vst [vmem:[%s1931_s22 + $0x40] sm:$0xff] %v1211_v59  ;;  %v1212_v61 = vmax.f32 %v1180_v8, 0.0 }
 0x1a9   : > { %1260 = vst [vmem:[%s1931_s22 + $0xc8] sm:$0xff] %v1228_v56  ;;  %1246 = vst [vmem:[%s1931_s22 + $0x58] sm:$0xff] %v1214_v60 }
 0x1aa   : > { %1244 = vst [vmem:[%s1931_s22 + $0x48] sm:$0xff] %v1212_v61 }
 0x1b7   : > { %v1480_v9 = vpop.f32.mrb[12].mxu1 }
 0x1b8   : > { %v1162_v53 = vmul.f32 %v1480_v9, %v1917_v26  ;;  %v1110_v16 = vpop.f32.mrb[13].mxu1  ;;  %v1464_v7 = vpop.f32.mrb[12].mxu0 }
 0x1b9   : > { %v1160_v62 = vmul.f32 %v1917_v26, %v1110_v16  ;;  %v1481_v63 = vpop.f32.mrb[14].mxu1  ;;  %v1146_v18 = vmul.f32 %v1464_v7, %v1917_v26  ;;  %v1046_v42 = vpop.f32.mrb[13].mxu0 }
 0x1ba   : > { %v1201_v3 = vadd.f32 %v1922_v28, %v1162_v53  ;;  %v1163_v5 = vmul.f32 %v1481_v63, %v1917_v26  ;;  %v1113_v6 = vpop.f32.mrb[15].mxu1  ;;  %v1144_v14 = vmul.f32 %v1917_v26, %v1046_v42  ;;  %v1465_v15 = vpop.f32.mrb[14].mxu0 }
 0x1bb   : > { %v1199_v10 = vadd.f32 %v1922_v28, %v1160_v62  ;;  %v1161_v0 = vmul.f32 %v1917_v26, %v1113_v6  ;;  %v1185_v19 = vadd.f32 %v1922_v28, %v1146_v18  ;;  %v1147_v21 = vmul.f32 %v1465_v15, %v1917_v26  ;;  %v1049_v22 = vpop.f32.mrb[15].mxu0 }
 0x1bc   : > { %v1233_v11 = vmax.f32 %v1201_v3, 0.0  ;;  %v1202_v13 = vadd.f32 %v1922_v28, %v1163_v5  ;;  %v1183_v23 = vadd.f32 %v1922_v28, %v1144_v14  ;;  %v1145_v20 = vmul.f32 %v1917_v26, %v1049_v22 }
 0x1bd   : > { %v1231_v12 = vmax.f32 %v1199_v10, 0.0  ;;  %v1200_v17 = vadd.f32 %v1922_v28, %v1161_v0  ;;  %v1217_v27 = vmax.f32 %v1185_v19, 0.0  ;;  %v1186_v25 = vadd.f32 %v1922_v28, %v1147_v21 }
 0x1be   : > { %1265 = vst [vmem:[%s1931_s22 + $0xf0] sm:$0xff] %v1233_v11  ;;  %v1234_v1 = vmax.f32 %v1202_v13, 0.0  ;;  %v1215_v32 = vmax.f32 %v1183_v23, 0.0  ;;  %v1184_v29 = vadd.f32 %v1922_v28, %v1145_v20 }
 0x1bf   : > { %1263 = vst [vmem:[%s1931_s22 + $0xe0] sm:$0xff] %v1231_v12  ;;  %v1232_v24 = vmax.f32 %v1200_v17, 0.0  ;;  %1249 = vst [vmem:[%s1931_s22 + $0x70] sm:$0xff] %v1217_v27  ;;  %v1218_v31 = vmax.f32 %v1186_v25, 0.0 }
 0x1c0   : > { %1266 = vst [vmem:[%s1931_s22 + $0xf8] sm:$0xff] %v1234_v1  ;;  %1247 = vst [vmem:[%s1931_s22 + $0x60] sm:$0xff] %v1215_v32  ;;  %v1216_v33 = vmax.f32 %v1184_v29, 0.0 }
 0x1c1   : > { %1264 = vst [vmem:[%s1931_s22 + $0xe8] sm:$0xff] %v1232_v24  ;;  %1250 = vst [vmem:[%s1931_s22 + $0x78] sm:$0xff] %v1218_v31 }
 0x1c2   : > { %1248 = vst [vmem:[%s1931_s22 + $0x68] sm:$0xff] %v1216_v33 }
 0x1c3 PF: > { %s15_s20 = sadd.s32 1, %s1571_s20   ;;  %s2040_s18 = smov %s1567_s19 }
 0x1c4   : > { %p12_p6 = scmp.ge.s32.totalorder %s15_s20, 4   ;;  %s2041_s19 = smov %s2043_s21 }
 0x1c6   :  { %14 = sbr.rel (!%p12_p6) target bundleno = 2 (0x2), region = 73 }

// kernel: upsampler_block.2
= control target key start
LH: loop header
LB: loop body
LE: loop exit
PB: predicated region body
PF: predicated region fallthrough
CT: control target
= control target key end

     0   :  { %s1502_s12 = smov 0   ;;  %s1504_s13 = smov 0   ;;  %s1819_s0 = inlined_call_operand.vmem [shape: bf16[2,17,17,4], index: 0, kind: input, shape index: {}, may-alias: {0,1}]   ;;  %s1820_s1 = inlined_call_operand.vmem [shape: bf16[2,17,17,4], index: 1, kind: input, shape index: {}, may-alias: {0,1}]   ;;  %s1821_s2 = inlined_call_operand.vmem [shape: bf16[16,128], index: 2, kind: input, shape index: {}]   ;;  %s1822_s3 = inlined_call_operand.vmem [shape: f32[16,128], index: 3, kind: output, shape index: {}]  }
   0x1   :  { %s1506_s14 = smov 0  }
   0x2 LB: > { %s25_s15 = sadd.s32 1, %s1473_s13  ;;  %p1278_p0 = scmp.ge.s32.totalorder %s1477_s14, 1  ;;  %s1477_s14 = sphi %s1506_s14, %s13_s14   ;;  %s1473_s13 = sphi %s1504_s13, %s1824_s13   ;;  %s1469_s12 = sphi %s1502_s12, %s1823_s12  }
   0x3   : > { %p27_p1 = scmp.ge.s32.totalorder %s25_s15, 2  ;;  %p193_p2 = scmp.lt.s32.totalorder %s1477_s14, 3 }
   0x5   : > { %s1826_s15 = smov (%p27_p1, %s25_s15), 0  ;;  %p194_p3 = pnand %p1278_p0, %p193_p2 }
   0x6   : > { %p244_p4 = scmp.lt.s32.totalorder (!%p194_p3), %s1469_s12, 1  ;;  %vm458_vm0 = vsmask.f32 (!%p194_p3), 7424  ;;  %s1479_s20 = smov (!%p194_p3), 8   ;;  %vm767_vm1 = vcmask (!%p194_p3), 31744   ;;  %vm800_vm2 = vcmask (!%p194_p3), 64512  }
   0x7   : > { %197 = sbr.rel (%p194_p3) target bundleno = 470 (0x1d6), region = 32  ;;  %s1480_s21 = smov (!%p194_p3), 4   ;;  %vm833_vm3 = vcmask (!%p194_p3), 97280   ;;  %vm874_vm4 = vcmask (!%p194_p3), 130048   ;;  %vm1174_vm5 = vcmask (!%p194_p3), 1040384   ;;  %vm1176_vm6 = vcmask (!%p194_p3), 1041408  }
   0x8   : > { %s1481_s22 = smov (!%p194_p3), 12  }
   0xe   : > { %s1828_s12 = smov (!%p244_p4, %s1469_s12), 1 }
   0xf   : > { %s1390_s16 = smul.u32 204, %s1828_s12  ;;  %s1281_s29 = sshll.u32 %s1828_s12, 3 }
  0x10   : > { %s276_s5 = scalar_lea.vmem %s1822_s3, %s1281_s29 }
  0x11   : > { %s1528_s19 = scalar_lea.vmem %s1819_s0, %s1390_s16  ;;  %s1336_s23 = sadd.s32 192, %s1390_s16 }
  0x12   : > { %v1531_v0 = vld [vmem:[%s1528_s19 + $0xc] sm:$0xff]   ;;  %v1534_v1 = vld [vmem:[%s1528_s19 + $0x24] sm:$0xff]   ;;  %v1539_v2 = vld [vmem:[%s1528_s19 + $0x18] sm:$0xff]   ;;  %s1631_s26 = scalar_lea.vmem %s1820_s1, %s1336_s23 }
  0x13   : > { %688 = vrot.lane.b32.xlu1 %v1531_v0, %s1479_s20  ;;  %v472_v3 = vshrl.u32 %v1531_v0, 16  ;;  %692 = vrot.lane.b32.xlu0 %v1534_v1, %s1479_s20  ;;  %v1545_v4 = vld [vmem:[%s1528_s19] sm:$0xff]   ;;  %v1424_v5 = vld [vmem:[%s1528_s19 + $0x8] ss:$0 sps:$4 sm:$0x11]   ;;  %v474_v7 = vshll.u32 %v1531_v0, 16 }
  0x14   : > { %v1549_v6 = vld [vmem:[%s1528_s19 + $0x30] sm:$0xff]   ;;  %v460_v8 = vshrl.u32 %v1545_v4, 16  ;;  %v462_v9 = vshll.u32 %v1545_v4, 16  ;;  %v467_v10 = vshll.u32 %v1424_v5, 16  ;;  %v484_v18 = vshrl.u32 %v1539_v2, 16  ;;  %v1566_v26 = vld [vmem:[%s1528_s19 + $0x3c] sm:$0xff]  }
  0x15   : > { %v1426_v11 = vld [vmem:[%s1528_s19 + $0x14] ss:$0 sps:$4 sm:$0x11]   ;;  %v476_v12 = vrot.slane %v474_v7, 1  ;;  %v486_v19 = vshll.u32 %v1539_v2, 16  ;;  %v496_v24 = vshrl.u32 %v1534_v1, 16 }
  0x16   : > { %v1427_v13 = vld [vmem:[%s1528_s19 + $0x20] ss:$0 sps:$4 sm:$0x11]   ;;  %v464_v14 = vrot.slane %v462_v9, 1  ;;  %v469_v15 = vrot.slane %v467_v10, 1  ;;  %v479_v16 = vshll.u32 %v1426_v11, 16 }
  0x17   : > { %690 = vrot.lane.b32.xlu1 %v1539_v2, %s1479_s20  ;;  %v477_v17 = vor.u32 %v476_v12, %v472_v3  ;;  %v491_v20 = vshll.u32 %v1427_v13, 16  ;;  %v1428_v21 = vld [vmem:[%s1528_s19 + $0x2c] ss:$0 sps:$4 sm:$0x11]   ;;  %v498_v25 = vshll.u32 %v1534_v1, 16  ;;  %v488_v27 = vrot.slane %v486_v19, 1 }
  0x18   : > { %v465_v22 = vor.u32 %v464_v14, %v460_v8  ;;  %v481_v23 = vrot.slane %v479_v16, 1  ;;  %v503_v29 = vshll.u32 %v1428_v21, 16  ;;  %v1429_v30 = vld [vmem:[%s1528_s19 + $0x38] ss:$0 sps:$4 sm:$0x11]   ;;  %v510_v33 = vshll.u32 %v1549_v6, 16 }
  0x19   : > { %v493_v28 = vrot.slane %v491_v20, 1  ;;  %v500_v32 = vrot.slane %v498_v25, 1  ;;  %v489_v34 = vor.u32 %v488_v27, %v484_v18  ;;  %v508_v36 = vshrl.u32 %v1549_v6, 16  ;;  %v1431_v41 = vld [vmem:[%s1528_s19 + $0x44] ss:$0 sps:$4 sm:$0x11]  }
  0x1a   : > { %v470_v31 = vsel %vm458_vm0, %v465_v22, %v469_v15  ;;  %v505_v35 = vrot.slane %v503_v29, 1  ;;  %v515_v37 = vshll.u32 %v1429_v30, 16  ;;  %v482_v38 = vsel %vm458_vm0, %v477_v17, %v481_v23  ;;  %v1580_v46 = vld [vmem:[%s1528_s19 + $0x48] sm:$0xff]   ;;  %v1433_v55 = vld [vmem:[%s1528_s19 + $0x50] ss:$0 sps:$4 sm:$0x11]  }
  0x1b   : > { %694 = vrot.lane.b32.xlu1 %v1549_v6, %s1479_s20  ;;  %651 = vrot.lane.b32.xlu0 %v470_v31, %s1480_s21  ;;  %v501_v39 = vor.u32 %v500_v32, %v496_v24  ;;  %v512_v40 = vrot.slane %v510_v33, 1  ;;  %v522_v42 = vshll.u32 %v1566_v26, 16  ;;  %v494_v43 = vsel %vm458_vm0, %v489_v34, %v493_v28  ;;  %v1590_v56 = vld [vmem:[%s1528_s19 + $0x54] sm:$0xff]   ;;  %v1435_v59 = vld [vmem:[%s1528_s19 + $0x5c] ss:$0 sps:$4 sm:$0x11]  }
  0x1c   : > { %v520_v44 = vshrl.u32 %v1566_v26, 16  ;;  %v517_v45 = vrot.slane %v515_v37, 1  ;;  %v527_v50 = vshll.u32 %v1431_v41, 16  ;;  %v534_v51 = vshll.u32 %v1580_v46, 16  ;;  %v1601_v3 = vld [vmem:[%s1528_s19 + $0x60] sm:$0xff]   ;;  %v1606_v11 = vld [vmem:[%s1528_s19 + $0xa8] sm:$0xff]  }
  0x1d   : > { %v506_v47 = vsel %vm458_vm0, %v501_v39, %v505_v35  ;;  %v513_v48 = vor.u32 %v512_v40, %v508_v36  ;;  %v524_v49 = vrot.slane %v522_v42, 1  ;;  %v532_v57 = vshrl.u32 %v1580_v46, 16  ;;  %v1437_v10 = vld [vmem:[%s1528_s19 + $0x68] ss:$0 sps:$4 sm:$0x11]   ;;  %v1612_v13 = vld [vmem:[%s1528_s19 + $0x6c] sm:$0xff]  }
  0x1e   : > { %v529_v54 = vrot.slane %v527_v50, 1  ;;  %v536_v58 = vrot.slane %v534_v51, 1  ;;  %v539_v61 = vshll.u32 %v1433_v55, 16  ;;  %v546_v62 = vshll.u32 %v1590_v56, 16  ;;  %v1635_v29 = vld [vmem:[%s1528_s19 + $0xb4] sm:$0xff]   ;;  %v1454_v42 = vld [vmem:[%s1821_s2] sm:$0xff]  }
  0x1f   : > { %737 = vrot.lane.b32.xlu1 %v494_v43, %s1481_s22  ;;  %653 = vrot.lane.b32.xlu0 %v482_v38, %s1480_s21  ;;  %v518_v52 = vsel %vm458_vm0, %v513_v48, %v517_v45  ;;  %v525_v53 = vor.u32 %v524_v49, %v520_v44  ;;  %v544_v63 = vshrl.u32 %v1590_v56, 16  ;;  %v551_v9 = vshll.u32 %v1435_v59, 16  ;;  %v1439_v19 = vld [vmem:[%s1528_s19 + $0x74] ss:$0 sps:$4 sm:$0x11]   ;;  %v1640_v35 = vld [vmem:[%s1528_s19 + $0x78] sm:$0xff]  }
  0x20   : > { %v537_v5 = vor.u32 %v536_v58, %v532_v57  ;;  %v541_v7 = vrot.slane %v539_v61, 1  ;;  %v548_v8 = vrot.slane %v546_v62, 1  ;;  %v558_v12 = vshll.u32 %v1601_v3, 16  ;;  %v1449_v25 = vld [vmem:[%s1528_s19 + $0xb0] ss:$0 sps:$4 sm:$0x11]   ;;  %1354 = vmatprep.subr.bf16.mxu0 %v1454_v42  ;;  %1388 = vmatprep.subr.bf16.mxu1 %v1454_v42 }
  0x21   : > { %v530_v60 = vsel %vm458_vm0, %v525_v53, %v529_v54  ;;  %v553_v16 = vrot.slane %v551_v9, 1  ;;  %v556_v17 = vshrl.u32 %v1601_v3, 16  ;;  %v563_v18 = vshll.u32 %v1437_v10, 16  ;;  %v1451_v32 = vld [vmem:[%s1528_s19 + $0xbc] ss:$0 sps:$4 sm:$0x11]   ;;  %1355 = vmatpush3.bf16.msra.mxu0 %v1454_v42  ;;  %1389 = vmatpush3.bf16.msra.mxu1 %v1454_v42 }
  0x22   : > { %v542_v14 = vsel %vm458_vm0, %v537_v5, %v541_v7  ;;  %v549_v15 = vor.u32 %v548_v8, %v544_v63  ;;  %v628_v20 = vshrl.u32 %v1606_v11, 16  ;;  %v630_v21 = vshll.u32 %v1606_v11, 16  ;;  %v1658_v53 = vld [vmem:[%s1528_s19 + $0x84] sm:$0xff]   ;;  %v1674_v9 = vld [vmem:[%s1528_s19 + $0x90] sm:$0xff]  }
  0x23   : > { %657 = vrot.lane.b32.xlu1 %v506_v47, %s1480_s21  ;;  %735 = vrot.lane.b32.xlu0 %v482_v38, %s1481_s22  ;;  %v560_v22 = vrot.slane %v558_v12, 1  ;;  %v570_v23 = vshll.u32 %v1612_v13, 16  ;;  %v568_v28 = vshrl.u32 %v1612_v13, 16  ;;  %v635_v31 = vshll.u32 %v1449_v25, 16 }
  0x24   : > { %v554_v24 = vsel %vm458_vm0, %v549_v15, %v553_v16  ;;  %v632_v27 = vrot.slane %v630_v21, 1  ;;  %v565_v34 = vrot.slane %v563_v18, 1  ;;  %v640_v36 = vshrl.u32 %v1635_v29, 16  ;;  %v1445_v15 = vld [vmem:[%s1528_s19 + $0x98] ss:$0 sps:$4 sm:$0x11]  }
  0x25   : > { %v561_v33 = vor.u32 %v560_v22, %v556_v17  ;;  %v642_v37 = vshll.u32 %v1635_v29, 16  ;;  %v572_v38 = vrot.slane %v570_v23, 1  ;;  %v575_v39 = vshll.u32 %v1439_v19, 16  ;;  %v1683_v17 = vld [vmem:[%s1528_s19 + $0x9c] sm:$0xff]  }
  0x26   : > { %v633_v30 = vor.u32 %v632_v27, %v628_v20  ;;  %v637_v40 = vrot.slane %v635_v31, 1  ;;  %v647_v41 = vshll.u32 %v1451_v32, 16  ;;  %v580_v55 = vshrl.u32 %v1640_v35, 16  ;;  %v1447_v22 = vld [vmem:[%s1528_s19 + $0xa4] ss:$0 sps:$4 sm:$0x11]  }
  0x27   : > { %741 = vrot.lane.b32.xlu1 %v518_v52, %s1481_s22  ;;  %655 = vrot.lane.b32.xlu0 %v494_v43, %s1480_s21  ;;  %v644_v43 = vrot.slane %v642_v37, 1  ;;  %v566_v49 = vsel %vm458_vm0, %v561_v33, %v565_v34  ;;  %v573_v50 = vor.u32 %v572_v38, %v568_v28  ;;  %v577_v51 = vrot.slane %v575_v39, 1  ;;  %v1453_v38 = vld [vmem:[%s1631_s26 + $0x8] ss:$0 sps:$4 sm:$0x11]  }
  0x28   : > { %v1649_v44 = vsel %vm458_vm0, %v633_v30, %v637_v40  ;;  %v649_v45 = vrot.slane %v647_v41, 1  ;;  %v594_v61 = vshll.u32 %v1658_v53, 16  ;;  %v592_v5 = vshrl.u32 %v1658_v53, 16 }
  0x29   : > { %v645_v48 = vor.u32 %v644_v43, %v640_v36  ;;  %v578_v58 = vsel %vm458_vm0, %v573_v50, %v577_v51  ;;  %v606_v16 = vshll.u32 %v1674_v9, 16  ;;  %v604_v18 = vshrl.u32 %v1674_v9, 16  ;;  %v1452_v36 = vld [vmem:[%s1631_s26] sm:$0xff]  }
  0x2a   : > { %v596_v7 = vrot.slane %v594_v61, 1  ;;  %v611_v21 = vshll.u32 %v1445_v15, 16  ;;  %v618_v23 = vshll.u32 %v1683_v17, 16  ;;  %v623_v30 = vshll.u32 %v1447_v22, 16 }
  0x2b   : > { %661 = vrot.lane.b32.xlu1 %v530_v60, %s1480_s21  ;;  %739 = vrot.lane.b32.xlu0 %v506_v47, %s1481_s22  ;;  %v582_v47 = vshll.u32 %v1640_v35, 16  ;;  %v1661_v54 = vsel %vm458_vm0, %v645_v48, %v649_v45  ;;  %v608_v20 = vrot.slane %v606_v16, 1  ;;  %v726_v37 = vshll.u32 %v1452_v36, 16 }
  0x2c   : > { %v597_v12 = vor.u32 %v596_v7, %v592_v5  ;;  %v613_v27 = vrot.slane %v611_v21, 1  ;;  %v620_v28 = vrot.slane %v618_v23, 1  ;;  %v625_v33 = vrot.slane %v623_v30, 1 }
  0x2d   : > { %v584_v57 = vrot.slane %v582_v47, 1  ;;  %v609_v25 = vor.u32 %v608_v20, %v604_v18  ;;  %v724_v39 = vshrl.u32 %v1452_v36, 16  ;;  %v728_v40 = vrot.slane %v726_v37, 1 }
  0x2e   : > { %v731_v41 = vshll.u32 %v1453_v38, 16 }
  0x2f   : > { %698 = vrot.lane.b32.xlu1 %v1580_v46, %s1479_s20  ;;  %659 = vrot.lane.b32.xlu0 %v518_v52, %s1480_s21  ;;  %v1441_v52 = vld [vmem:[%s1528_s19 + $0x80] ss:$0 sps:$4 sm:$0x11]   ;;  %v585_v62 = vor.u32 %v584_v57, %v580_v55  ;;  %v614_v31 = vsel %vm458_vm0, %v609_v25, %v613_v27  ;;  %v729_v42 = vor.u32 %v728_v40, %v724_v39 }
  0x30   : > { %v587_v59 = vshll.u32 %v1441_v52, 16  ;;  %v733_v43 = vrot.slane %v731_v41, 1 }
  0x32   : > { %v589_v63 = vrot.slane %v587_v59, 1  ;;  %v734_v45 = vsel %vm458_vm0, %v729_v42, %v733_v43 }
  0x33   : > { %745 = vrot.lane.b32.xlu1 %v542_v14, %s1481_s22  ;;  %696 = vrot.lane.b32.xlu0 %v1566_v26, %s1479_s20 }
  0x34   : > { %v590_v10 = vsel %vm458_vm0, %v585_v62, %v589_v63 }
  0x37   : > { %665 = vrot.lane.b32.xlu1 %v554_v24, %s1480_s21  ;;  %743 = vrot.lane.b32.xlu0 %v530_v60, %s1481_s22  ;;  %v1443_v60 = vld [vmem:[%s1528_s19 + $0x8c] ss:$0 sps:$4 sm:$0x11]  }
  0x38   : > { %v599_v8 = vshll.u32 %v1443_v60, 16 }
  0x3b   : > { %702 = vrot.lane.b32.xlu1 %v1601_v3, %s1479_s20  ;;  %663 = vrot.lane.b32.xlu0 %v542_v14, %s1480_s21  ;;  %v601_v14 = vrot.slane %v599_v8, 1 }
  0x3d   : > { %v602_v19 = vsel %vm458_vm0, %v597_v12, %v601_v14 }
  0x3f   : > { %749 = vrot.lane.b32.xlu1 %v566_v49, %s1481_s22  ;;  %700 = vrot.lane.b32.xlu0 %v1590_v56, %s1479_s20 }
  0x43   : > { %669 = vrot.lane.b32.xlu1 %v578_v58, %s1480_s21  ;;  %747 = vrot.lane.b32.xlu0 %v554_v24, %s1481_s22  ;;  %v616_v24 = vshrl.u32 %v1683_v17, 16 }
  0x45   : > { %v621_v32 = vor.u32 %v620_v28, %v616_v24 }
  0x47   : > { %706 = vrot.lane.b32.xlu1 %v1640_v35, %s1479_s20  ;;  %667 = vrot.lane.b32.xlu0 %v566_v49, %s1480_s21  ;;  %v626_v34 = vsel %vm458_vm0, %v621_v32, %v625_v33 }
  0x4b   : > { %753 = vrot.lane.b32.xlu1 %v590_v10, %s1481_s22  ;;  %704 = vrot.lane.b32.xlu0 %v1612_v13, %s1479_s20 }
  0x4f   : > { %673 = vrot.lane.b32.xlu1 %v602_v19, %s1480_s21  ;;  %751 = vrot.lane.b32.xlu0 %v578_v58, %s1481_s22 }
  0x53   : > { %710 = vrot.lane.b32.xlu1 %v1674_v9, %s1479_s20  ;;  %671 = vrot.lane.b32.xlu0 %v590_v10, %s1480_s21 }
  0x57   : > { %757 = vrot.lane.b32.xlu1 %v614_v31, %s1481_s22  ;;  %708 = vrot.lane.b32.xlu0 %v1658_v53, %s1479_s20 }
  0x5b   : > { %677 = vrot.lane.b32.xlu1 %v626_v34, %s1480_s21  ;;  %755 = vrot.lane.b32.xlu0 %v602_v19, %s1481_s22 }
  0x5f   : > { %714 = vrot.lane.b32.xlu1 %v1606_v11, %s1479_s20  ;;  %675 = vrot.lane.b32.xlu0 %v614_v31, %s1480_s21 }
  0x63   : > { %761 = vrot.lane.b32.xlu1 %v1649_v44, %s1481_s22  ;;  %712 = vrot.lane.b32.xlu0 %v1683_v17, %s1479_s20 }
  0x67   : > { %681 = vrot.lane.b32.xlu1 %v1661_v54, %s1480_s21  ;;  %759 = vrot.lane.b32.xlu0 %v626_v34, %s1481_s22 }
  0x6b   : > { %718 = vrot.lane.b32.xlu1 %v1452_v36, %s1479_s20  ;;  %679 = vrot.lane.b32.xlu0 %v1649_v44, %s1480_s21 }
  0x6f   : > { %765 = vrot.lane.b32.xlu1 %v734_v45, %s1481_s22  ;;  %716 = vrot.lane.b32.xlu0 %v1635_v29, %s1479_s20 }
  0x73   : > { %763 = vrot.lane.b32.xlu0 %v1661_v54, %s1481_s22 }
  0x85   : > { %v689_v47 = vpop.permute.xlu1 %688  ;;  %v693_v49 = vpop.permute.xlu0 %692 }
  0x89   : > { %v691_v48 = vpop.permute.xlu1 %690 }
  0x8d   : > { %v695_v50 = vpop.permute.xlu1 %694  ;;  %v652_v51 = vpop.permute.xlu0 %651 }
  0x8e   : > { %v769_v44 = vsel %vm767_vm1, %v1545_v4, %v652_v51 }
  0x8f   : > { %v802_v60 = vsel %vm800_vm2, %v769_v44, %v689_v47 }
  0x91   : > { %v738_v52 = vpop.permute.xlu1 %737  ;;  %v654_v55 = vpop.permute.xlu0 %653 }
  0x92   : > { %v771_v57 = vsel %vm767_vm1, %v1531_v0, %v654_v55 }
  0x93   : > { %v804_v58 = vsel %vm800_vm2, %v771_v57, %v691_v48 }
  0x94   : > { %v837_v62 = vsel %vm833_vm3, %v804_v58, %v738_v52 }
  0x95   : > { %v658_v59 = vpop.permute.xlu1 %657  ;;  %v736_v54 = vpop.permute.xlu0 %735 }
  0x96   : > { %v835_v61 = vsel %vm833_vm3, %v802_v60, %v736_v54  ;;  %v775_v5 = vsel %vm767_vm1, %v1534_v1, %v658_v59 }
  0x97   : > { %1356 = vmatprep.mubr.msk.bf16.mxu0 %vm874_vm4, %v835_v61  ;;  %v808_v12 = vsel %vm800_vm2, %v775_v5, %v695_v50 }
  0x98   : > { %1357 = vmatmul.mubr.msk.bf16.vlgmr.msra.gmra.mrb[0].mxu0 %vm874_vm4, %v837_v62 }
  0x99   : > { %v742_v4 = vpop.permute.xlu1 %741  ;;  %v656_v63 = vpop.permute.xlu0 %655 }
  0x9a   : > { %v773_v0 = vsel %vm767_vm1, %v1539_v2, %v656_v63  ;;  %v841_v15 = vsel %vm833_vm3, %v808_v12, %v742_v4 }
  0x9b   : > { %v806_v8 = vsel %vm800_vm2, %v773_v0, %v693_v49 }
  0x9d   : > { %v662_v7 = vpop.permute.xlu1 %661  ;;  %v740_v10 = vpop.permute.xlu0 %739 }
  0x9e   : > { %v839_v14 = vsel %vm833_vm3, %v806_v8, %v740_v10  ;;  %v779_v1 = vsel %vm767_vm1, %v1566_v26, %v662_v7 }
  0x9f   : > { %1360 = vmatprep.mubr.msk.bf16.mxu0 %vm874_vm4, %v839_v14 }
  0xa0   : > { %1361 = vmatmul.mubr.msk.bf16.gmra.mrb[4].mxu0 %vm874_vm4, %v841_v15 }
  0xa1   : > { %v699_v16 = vpop.permute.xlu1 %698  ;;  %v660_v18 = vpop.permute.xlu0 %659 }
  0xa2   : > { %v777_v20 = vsel %vm767_vm1, %v1549_v6, %v660_v18  ;;  %v812_v24 = vsel %vm800_vm2, %v779_v1, %v699_v16 }
  0xa5   : > { %v746_v2 = vpop.permute.xlu1 %745  ;;  %v697_v19 = vpop.permute.xlu0 %696 }
  0xa6   : > { %v810_v22 = vsel %vm800_vm2, %v777_v20, %v697_v19  ;;  %v845_v27 = vsel %vm833_vm3, %v812_v24, %v746_v2 }
  0xa9   : > { %v666_v21 = vpop.permute.xlu1 %665  ;;  %v744_v23 = vpop.permute.xlu0 %743 }
  0xaa   : > { %v843_v25 = vsel %vm833_vm3, %v810_v22, %v744_v23  ;;  %v783_v6 = vsel %vm767_vm1, %v1590_v56, %v666_v21 }
  0xab   : > { %1364 = vmatprep.mubr.msk.bf16.mxu0 %vm874_vm4, %v843_v25 }
  0xac   : > { %1365 = vmatmul.mubr.msk.bf16.gmra.mrb[8].mxu0 %vm874_vm4, %v845_v27 }
  0xad   : > { %v703_v28 = vpop.permute.xlu1 %702  ;;  %v664_v30 = vpop.permute.xlu0 %663 }
  0xae   : > { %v781_v32 = vsel %vm767_vm1, %v1580_v46, %v664_v30  ;;  %v816_v37 = vsel %vm800_vm2, %v783_v6, %v703_v28 }
  0xb1   : > { %v750_v26 = vpop.permute.xlu1 %749  ;;  %v701_v31 = vpop.permute.xlu0 %700 }
  0xb2   : > { %v814_v34 = vsel %vm800_vm2, %v781_v32, %v701_v31  ;;  %v849_v39 = vsel %vm833_vm3, %v816_v37, %v750_v26 }
  0xb5   : > { %v670_v33 = vpop.permute.xlu1 %669  ;;  %v748_v36 = vpop.permute.xlu0 %747 }
  0xb6   : > { %v847_v38 = vsel %vm833_vm3, %v814_v34, %v748_v36  ;;  %v787_v46 = vsel %vm767_vm1, %v1612_v13, %v670_v33 }
  0xb7   : > { %1368 = vmatprep.mubr.msk.bf16.mxu0 %vm874_vm4, %v847_v38 }
  0xb8   : > { %1369 = vmatmul.mubr.msk.bf16.gmra.mrb[12].mxu0 %vm874_vm4, %v849_v39 }
  0xb9   : > { %v707_v40 = vpop.permute.xlu1 %706  ;;  %v668_v41 = vpop.permute.xlu0 %667 }
  0xba   : > { %v785_v43 = vsel %vm767_vm1, %v1601_v3, %v668_v41  ;;  %v820_v49 = vsel %vm800_vm2, %v787_v46, %v707_v40 }
  0xbd   : > { %v754_v56 = vpop.permute.xlu1 %753  ;;  %v705_v42 = vpop.permute.xlu0 %704 }
  0xbe   : > { %v818_v47 = vsel %vm800_vm2, %v785_v43, %v705_v42  ;;  %v853_v51 = vsel %vm833_vm3, %v820_v49, %v754_v56 }
  0xc1   : > { %v674_v45 = vpop.permute.xlu1 %673  ;;  %v752_v48 = vpop.permute.xlu0 %751 }
  0xc2   : > { %v851_v50 = vsel %vm833_vm3, %v818_v47, %v752_v48  ;;  %v791_v3 = vsel %vm767_vm1, %v1658_v53, %v674_v45 }
  0xc3   : > { %1372 = vmatprep.mubr.msk.bf16.mxu1 %vm874_vm4, %v851_v50 }
  0xc4   : > { %1373 = vmatmul.mubr.msk.bf16.vlgmr.msra.gmra.mrb[0].mxu1 %vm874_vm4, %v853_v51 }
  0xc5   : > { %v711_v52 = vpop.permute.xlu1 %710  ;;  %v672_v55 = vpop.permute.xlu0 %671 }
  0xc6   : > { %v789_v57 = vsel %vm767_vm1, %v1640_v35, %v672_v55  ;;  %v824_v60 = vsel %vm800_vm2, %v791_v3, %v711_v52 }
  0xc9   : > { %v758_v13 = vpop.permute.xlu1 %757  ;;  %v709_v44 = vpop.permute.xlu0 %708 }
  0xca   : > { %v822_v59 = vsel %vm800_vm2, %v789_v57, %v709_v44  ;;  %v857_v62 = vsel %vm833_vm3, %v824_v60, %v758_v13 }
  0xcd   : > { %v678_v58 = vpop.permute.xlu1 %677  ;;  %v756_v54 = vpop.permute.xlu0 %755 }
  0xce   : > { %v855_v61 = vsel %vm833_vm3, %v822_v59, %v756_v54  ;;  %v795_v35 = vsel %vm767_vm1, %v1683_v17, %v678_v58 }
  0xcf   : > { %1376 = vmatprep.mubr.msk.bf16.mxu1 %vm874_vm4, %v855_v61 }
  0xd0   : > { %1377 = vmatmul.mubr.msk.bf16.gmra.mrb[4].mxu1 %vm874_vm4, %v857_v62 }
  0xd1   : > { %v715_v4 = vpop.permute.xlu1 %714  ;;  %v676_v63 = vpop.permute.xlu0 %675 }
  0xd2   : > { %v793_v5 = vsel %vm767_vm1, %v1674_v9, %v676_v63  ;;  %v828_v12 = vsel %vm800_vm2, %v795_v35, %v715_v4 }
  0xd5   : > { %v762_v53 = vpop.permute.xlu1 %761  ;;  %v713_v0 = vpop.permute.xlu0 %712 }
  0xd6   : > { %v826_v8 = vsel %vm800_vm2, %v793_v5, %v713_v0  ;;  %v861_v15 = vsel %vm833_vm3, %v828_v12, %v762_v53 }
  0xd9   : > { %v682_v7 = vpop.permute.xlu1 %681  ;;  %v760_v10 = vpop.permute.xlu0 %759 }
  0xda   : > { %v859_v14 = vsel %vm833_vm3, %v826_v8, %v760_v10  ;;  %v799_v9 = vsel %vm767_vm1, %v1635_v29, %v682_v7 }
  0xdb   : > { %1380 = vmatprep.mubr.msk.bf16.mxu1 %vm874_vm4, %v859_v14 }
  0xdc   : > { %1381 = vmatmul.mubr.msk.bf16.gmra.mrb[8].mxu1 %vm874_vm4, %v861_v15 }
  0xdd   : > { %v680_v16 = vpop.permute.xlu0 %679  ;;  %v719_v18 = vpop.permute.xlu1 %718 }
  0xde   : > { %v797_v2 = vsel %vm767_vm1, %v1606_v11, %v680_v16  ;;  %v832_v21 = vsel %vm800_vm2, %v799_v9, %v719_v18 }
  0xe1   : > { %v717_v17 = vpop.permute.xlu0 %716  ;;  %v766_v19 = vpop.permute.xlu1 %765 }
  0xe2   : > { %v830_v1 = vsel %vm800_vm2, %v797_v2, %v717_v17  ;;  %v865_v23 = vsel %vm833_vm3, %v832_v21, %v766_v19 }
  0xe5   : > { %v764_v20 = vpop.permute.xlu0 %763 }
  0xe6   : > { %v863_v22 = vsel %vm833_vm3, %v830_v1, %v764_v20 }
  0xe7   : > { %1384 = vmatprep.mubr.msk.bf16.mxu1 %vm874_vm4, %v863_v22 }
  0xe8   : > { %1385 = vmatmul.mubr.msk.bf16.gmra.mrb[12].mxu1 %vm874_vm4, %v865_v23 }
 0x16b   : > { %v1358_v24 = vpop.f32.mrb[0].mxu0 }
 0x16c   : > { %v941_v25 = vpop.f32.mrb[1].mxu0  ;;  %v1107_v26 = vmul.f32 %v1358_v24, %v1358_v24 }
 0x16d   : > { %v1359_v29 = vpop.f32.mrb[2].mxu0  ;;  %v1105_v28 = vmul.f32 %v941_v25, %v941_v25 }
 0x16e   : > { %v944_v27 = vpop.f32.mrb[3].mxu0  ;;  %v1108_v32 = vmul.f32 %v1359_v29, %v1359_v29 }
 0x16f   : > { %v1068_v11 = vadd.f32 %v944_v27, %v941_v25  ;;  %v1106_v30 = vmul.f32 %v944_v27, %v944_v27 }
 0x171   : > { %v1069_v31 = vadd.f32 %v1358_v24, %v1068_v11  ;;  %v1137_v6 = vadd.f32 %v1106_v30, %v1105_v28 }
 0x173   : > { %v1138_v33 = vadd.f32 %v1137_v6, %v1107_v26  ;;  %v1362_v34 = vpop.f32.mrb[4].mxu0  ;;  %v1070_v36 = vadd.f32 %v1359_v29, %v1069_v31 }
 0x174   : > { %v957_v37 = vpop.f32.mrb[5].mxu0  ;;  %v1111_v45 = vmul.f32 %v1362_v34, %v1362_v34 }
 0x175   : > { %v1071_v38 = vadd.f32 %v1070_v36, %v957_v37  ;;  %v1109_v39 = vmul.f32 %v957_v37, %v957_v37  ;;  %v1139_v40 = vadd.f32 %v1138_v33, %v1108_v32  ;;  %v1363_v41 = vpop.f32.mrb[6].mxu0 }
 0x176   : > { %v960_v56 = vpop.f32.mrb[7].mxu0  ;;  %v1112_v49 = vmul.f32 %v1363_v41, %v1363_v41 }
 0x177   : > { %v1140_v42 = vadd.f32 %v1139_v40, %v1109_v39  ;;  %v1072_v46 = vadd.f32 %v1071_v38, %v960_v56  ;;  %v1110_v43 = vmul.f32 %v960_v56, %v960_v56 }
 0x179   : > { %v1073_v47 = vadd.f32 %v1362_v34, %v1072_v46  ;;  %v1141_v48 = vadd.f32 %v1140_v42, %v1110_v43 }
 0x17b   : > { %v1142_v50 = vadd.f32 %v1141_v48, %v1111_v45  ;;  %v1074_v51 = vadd.f32 %v1363_v41, %v1073_v47 }
 0x17d   : > { %v1143_v52 = vadd.f32 %v1142_v50, %v1112_v49 }
 0x17f   : > { %v1366_v55 = vpop.f32.mrb[8].mxu0 }
 0x180   : > { %v973_v13 = vpop.f32.mrb[9].mxu0  ;;  %v1115_v61 = vmul.f32 %v1366_v55, %v1366_v55 }
 0x181   : > { %v1075_v44 = vadd.f32 %v1074_v51, %v973_v13  ;;  %v1113_v3 = vmul.f32 %v973_v13, %v973_v13  ;;  %v1367_v57 = vpop.f32.mrb[10].mxu0 }
 0x182   : > { %v976_v58 = vpop.f32.mrb[11].mxu0  ;;  %v1116_v63 = vmul.f32 %v1367_v57, %v1367_v57 }
 0x183   : > { %v1144_v59 = vadd.f32 %v1143_v52, %v1113_v3  ;;  %v1076_v54 = vadd.f32 %v1075_v44, %v976_v58  ;;  %v1114_v60 = vmul.f32 %v976_v58, %v976_v58 }
 0x185   : > { %v1077_v62 = vadd.f32 %v1366_v55, %v1076_v54  ;;  %v1145_v4 = vadd.f32 %v1144_v59, %v1114_v60 }
 0x187   : > { %v1146_v53 = vadd.f32 %v1145_v4, %v1115_v61  ;;  %v1078_v0 = vadd.f32 %v1367_v57, %v1077_v62 }
 0x189   : > { %v1147_v35 = vadd.f32 %v1146_v53, %v1116_v63 }
 0x18b   : > { %v1370_v5 = vpop.f32.mrb[12].mxu0 }
 0x18c   : > { %v989_v7 = vpop.f32.mrb[13].mxu0  ;;  %v1119_v17 = vmul.f32 %v1370_v5, %v1370_v5 }
 0x18d   : > { %v1079_v8 = vadd.f32 %v1078_v0, %v989_v7  ;;  %v1117_v10 = vmul.f32 %v989_v7, %v989_v7  ;;  %v1371_v12 = vpop.f32.mrb[14].mxu0 }
 0x18e   : > { %v992_v14 = vpop.f32.mrb[15].mxu0  ;;  %v1120_v19 = vmul.f32 %v1371_v12, %v1371_v12 }
 0x18f   : > { %v1148_v15 = vadd.f32 %v1147_v35, %v1117_v10  ;;  %v1080_v16 = vadd.f32 %v1079_v8, %v992_v14  ;;  %v1118_v18 = vmul.f32 %v992_v14, %v992_v14 }
 0x191   : > { %v1081_v9 = vadd.f32 %v1370_v5, %v1080_v16  ;;  %v1149_v2 = vadd.f32 %v1148_v15, %v1118_v18 }
 0x193   : > { %v1150_v1 = vadd.f32 %v1149_v2, %v1119_v17  ;;  %v1082_v20 = vadd.f32 %v1371_v12, %v1081_v9 }
 0x195   : > { %v1151_v21 = vadd.f32 %v1150_v1, %v1120_v19 }
 0x197   : > { %v1374_v22 = vpop.f32.mrb[0].mxu1 }
 0x198   : > { %v1005_v23 = vpop.f32.mrb[1].mxu1  ;;  %v1123_v26 = vmul.f32 %v1374_v22, %v1374_v22 }
 0x199   : > { %v1083_v24 = vadd.f32 %v1082_v20, %v1005_v23  ;;  %v1121_v25 = vmul.f32 %v1005_v23, %v1005_v23  ;;  %v1375_v29 = vpop.f32.mrb[2].mxu1 }
 0x19a   : > { %v1008_v27 = vpop.f32.mrb[3].mxu1  ;;  %v1124_v32 = vmul.f32 %v1375_v29, %v1375_v29 }
 0x19b   : > { %v1152_v28 = vadd.f32 %v1151_v21, %v1121_v25  ;;  %v1084_v11 = vadd.f32 %v1083_v24, %v1008_v27  ;;  %v1122_v30 = vmul.f32 %v1008_v27, %v1008_v27 }
 0x19d   : > { %v1085_v31 = vadd.f32 %v1374_v22, %v1084_v11  ;;  %v1153_v6 = vadd.f32 %v1152_v28, %v1122_v30 }
 0x19f   : > { %v1154_v33 = vadd.f32 %v1153_v6, %v1123_v26  ;;  %v1086_v34 = vadd.f32 %v1375_v29, %v1085_v31 }
 0x1a1   : > { %v1155_v36 = vadd.f32 %v1154_v33, %v1124_v32 }
 0x1a3   : > { %v1378_v37 = vpop.f32.mrb[4].mxu1 }
 0x1a4   : > { %v1021_v38 = vpop.f32.mrb[5].mxu1  ;;  %v1127_v45 = vmul.f32 %v1378_v37, %v1378_v37 }
 0x1a5   : > { %v1087_v39 = vadd.f32 %v1086_v34, %v1021_v38  ;;  %v1125_v40 = vmul.f32 %v1021_v38, %v1021_v38  ;;  %v1379_v41 = vpop.f32.mrb[6].mxu1 }
 0x1a6   : > { %v1024_v56 = vpop.f32.mrb[7].mxu1  ;;  %v1128_v49 = vmul.f32 %v1379_v41, %v1379_v41 }
 0x1a7   : > { %v1156_v42 = vadd.f32 %v1155_v36, %v1125_v40  ;;  %v1088_v46 = vadd.f32 %v1087_v39, %v1024_v56  ;;  %v1126_v43 = vmul.f32 %v1024_v56, %v1024_v56 }
 0x1a9   : > { %v1089_v47 = vadd.f32 %v1378_v37, %v1088_v46  ;;  %v1157_v48 = vadd.f32 %v1156_v42, %v1126_v43 }
 0x1ab   : > { %v1158_v50 = vadd.f32 %v1157_v48, %v1127_v45  ;;  %v1090_v51 = vadd.f32 %v1379_v41, %v1089_v47 }
 0x1ad   : > { %v1159_v52 = vadd.f32 %v1158_v50, %v1128_v49 }
 0x1af   : > { %v1382_v55 = vpop.f32.mrb[8].mxu1 }
 0x1b0   : > { %v1037_v13 = vpop.f32.mrb[9].mxu1  ;;  %v1131_v61 = vmul.f32 %v1382_v55, %v1382_v55 }
 0x1b1   : > { %v1091_v44 = vadd.f32 %v1090_v51, %v1037_v13  ;;  %v1129_v3 = vmul.f32 %v1037_v13, %v1037_v13  ;;  %v1383_v57 = vpop.f32.mrb[10].mxu1 }
 0x1b2   : > { %v1040_v58 = vpop.f32.mrb[11].mxu1  ;;  %v1132_v63 = vmul.f32 %v1383_v57, %v1383_v57 }
 0x1b3   : > { %v1160_v59 = vadd.f32 %v1159_v52, %v1129_v3  ;;  %v1092_v54 = vadd.f32 %v1091_v44, %v1040_v58  ;;  %v1130_v60 = vmul.f32 %v1040_v58, %v1040_v58 }
 0x1b5   : > { %v1093_v62 = vadd.f32 %v1382_v55, %v1092_v54  ;;  %v1161_v4 = vadd.f32 %v1160_v59, %v1130_v60 }
 0x1b7   : > { %v1162_v53 = vadd.f32 %v1161_v4, %v1131_v61  ;;  %v1094_v0 = vadd.f32 %v1383_v57, %v1093_v62 }
 0x1b9   : > { %v1163_v35 = vadd.f32 %v1162_v53, %v1132_v63 }
 0x1bb   : > { %v1386_v5 = vpop.f32.mrb[12].mxu1 }
 0x1bc   : > { %v1053_v7 = vpop.f32.mrb[13].mxu1  ;;  %v1135_v17 = vmul.f32 %v1386_v5, %v1386_v5 }
 0x1bd   : > { %v1095_v8 = vadd.f32 %v1094_v0, %v1053_v7  ;;  %v1133_v10 = vmul.f32 %v1053_v7, %v1053_v7  ;;  %v1387_v12 = vpop.f32.mrb[14].mxu1 }
 0x1be   : > { %v1056_v14 = vpop.f32.mrb[15].mxu1  ;;  %v1136_v19 = vmul.f32 %v1387_v12, %v1387_v12 }
 0x1bf   : > { %v1164_v15 = vadd.f32 %v1163_v35, %v1133_v10  ;;  %v1096_v16 = vadd.f32 %v1095_v8, %v1056_v14  ;;  %v1134_v18 = vmul.f32 %v1056_v14, %v1056_v14 }
 0x1c1   : > { %v1097_v9 = vadd.f32 %v1386_v5, %v1096_v16  ;;  %v1165_v2 = vadd.f32 %v1164_v15, %v1134_v18 }
 0x1c3   : > { %v1098_v1 = vadd.f32 %v1387_v12, %v1097_v9  ;;  %v1166_v20 = vadd.f32 %v1165_v2, %v1135_v17 }
 0x1c5   : > { %v1099_v21 = vrot.slane %v1098_v1, 4  ;;  %v1167_v22 = vadd.f32 %v1166_v20, %v1136_v19 }
 0x1c7   : > { %v1100_v23 = vadd.f32 %v1099_v21, %v1098_v1  ;;  %v1168_v24 = vrot.slane %v1167_v22, 4 }
 0x1c9   : > { %v1101_v25 = vrot.slane %v1100_v23, 2  ;;  %v1169_v29 = vadd.f32 %v1168_v24, %v1167_v22 }
 0x1cb   : > { %v1102_v27 = vadd.f32 %v1101_v25, %v1100_v23  ;;  %v1170_v28 = vrot.slane %v1169_v29, 2 }
 0x1cd   : > { %v1103_v11 = vrot.slane %v1102_v27, 1  ;;  %v1171_v30 = vadd.f32 %v1170_v28, %v1169_v29 }
 0x1cf   : > { %v1172_v26 = vrot.slane %v1171_v30, 1  ;;  %v1104_v31 = vadd.f32 %v1103_v11, %v1102_v27 }
 0x1d1   : > { %v1173_v6 = vadd.f32 %v1172_v26, %v1171_v30 }
 0x1d3   : > { %v1175_v32 = vsel %vm1174_vm5, %v1104_v31, %v1173_v6 }
 0x1d4   : > { %v1177_v33 = vsel %vm1176_vm6, %v1175_v32, 0.0 }
 0x1d5   : > { %1178 = vst [vmem:[%s276_s5] sm:$0xff] %v1177_v33 }
 0x1d6 PF: > { %s13_s14 = sadd.s32 1, %s1477_s14   ;;  %s1823_s12 = smov %s1473_s13 }
 0x1d7   : > { %p10_p5 = scmp.ge.s32.totalorder %s13_s14, 4   ;;  %s1824_s13 = smov %s1826_s15 }
 0x1d9   :  { %12 = sbr.rel (!%p10_p5) target bundleno = 2 (0x2), region = 65 }

</bundles_post_ra>
